<compile_context>
chip_gen: v7x
topology: tpu7x:2x2x1
jax: 0.10.0
libtpu: 0.0.40
codegen_flags: <defaults>
</compile_context>

<pallas_src>
import jax
import jax.numpy as jnp
from jax.experimental import pallas as pl
from jax.experimental.pallas import tpu as pltpu


# ----------------------------- fused Pallas kernel ---------------------------

def gmn_fused_kernel(
        # inputs constant across layers
        nf_ref, ef_ref, idx_row_ref, idx_col_ref, gidx_ref,
        enc_wn_ref, enc_bn_ref, enc_we_ref, enc_be_ref,
        wgv_ref, bgv_ref,
        # per-layer stacked weights (grid axis selects the layer slice)
        w1_ref, w2_ref, wn1_ref, wn2_ref, b_ref,
        # output
        out_ref,
        # persistent VMEM scratch (carried across grid steps)
        ns_sc, es_sc, foh_en, toh_en, toh_ne, foh_ne):
    l = pl.program_id(0)
    n_layers = pl.num_programs(0)

    # static dims derived from ref shapes (no kwargs needed)
    d = ns_sc.shape[1]                  # node_state_dim
    two_h = w1_ref.shape[-1]            # fused fwd|rev hidden width
    two_m = w2_ref.shape[-1]            # fused fwd|rev message width
    msg_dim = two_m // 2
    node_hid = wn1_ref.shape[-1]
    rep_dim = out_ref.shape[1]

    # -------- grid step 0: encoder + one-hot construction (hoisted out of the
    # layer loop; indices never change across layers) --------
    @pl.when(l == 0)
    def _():
        ns_sc[...] = (jnp.dot(nf_ref[...], enc_wn_ref[...],
                              preferred_element_type=jnp.float32)
                      + enc_bn_ref[...])
        es_sc[...] = (jnp.dot(ef_ref[...], enc_we_ref[...],
                              preferred_element_type=jnp.float32)
                      + enc_be_ref[...])
        n_edges, n_nodes = foh_en.shape
        from_row = idx_row_ref[:, 0:1]                       # [E, 1]
        to_row = idx_row_ref[:, 1:2]                         # [E, 1]
        iota_en = jax.lax.broadcasted_iota(jnp.int32, (n_edges, n_nodes), 1)
        # 0/1 values are exact in bf16 -> halve the dominant VMEM scratch.
        foh_en[...] = jnp.where(iota_en == from_row, 1.0, 0.0).astype(jnp.bfloat16)
        toh_en[...] = jnp.where(iota_en == to_row, 1.0, 0.0).astype(jnp.bfloat16)
        from_col = idx_col_ref[0:1, :]                       # [1, E]
        to_col = idx_col_ref[1:2, :]                         # [1, E]
        iota_ne = jax.lax.broadcasted_iota(jnp.int32, (n_nodes, n_edges), 0)
        toh_ne[...] = jnp.where(iota_ne == to_col, 1.0, 0.0).astype(jnp.bfloat16)
        foh_ne[...] = jnp.where(iota_ne == from_col, 1.0, 0.0).astype(jnp.bfloat16)
        # never let the (tiny) output block be written back uninitialised
        out_ref[...] = jnp.zeros_like(out_ref)

    # -------- propagation layer l --------
    ns = ns_sc[...]                                          # [N, D]  f32
    es = es_sc[...]                                          # [E, De] f32

    w1 = w1_ref[0]                                           # [2D+De, 2H]
    wn1 = wn1_ref[0]                                         # [M+D, NH]
    b_all = b_ref[0]                                         # [4, bias_w]
    b1 = b_all[0:1, :two_h]                                  # [1, 2H]
    b2 = b_all[1:2, :two_m]                                  # [1, 2M]
    bn1 = b_all[2:3, :node_hid]                              # [1, NH]
    bn2 = b_all[3:4, :d]                                     # [1, D]

    # gather node states for each edge (one-hot matmuls on the MXU, f32 acc)
    from_states = jnp.dot(foh_en[...].astype(jnp.float32), ns,
                          preferred_element_type=jnp.float32)   # [E, D]
    to_states = jnp.dot(toh_en[...].astype(jnp.float32), ns,
                        preferred_element_type=jnp.float32)     # [E, D]

    # forward + reverse message nets fused column-wise:
    #   h[:, :H]   = relu(concat([from, to, ef]) @ wf1 + bf1)
    #   h[:, H:2H] = relu(concat([to, from, ef]) @ wr1 + br1)
    # (row splits of w1 are sublane-aligned -> free)
    h = (jnp.dot(from_states, w1[:d], preferred_element_type=jnp.float32)
         + jnp.dot(to_states, w1[d:2 * d], preferred_element_type=jnp.float32)
         + jnp.dot(es, w1[2 * d:], preferred_element_type=jnp.float32)
         + b1)
    h = jnp.maximum(h, 0.0)                                  # [E, 2H] 128 lanes
    # block-diagonal second layer -> msg[:, :M] fwd messages, msg[:, M:] rev
    msg = jnp.dot(h, w2_ref[0], preferred_element_type=jnp.float32) + b2

    # unsorted_segment_sum as plain [N,E] @ [E,M] dots.
    # NOTE: msg slices at the 64-lane boundary are sub-vreg masked accesses;
    # accepted (restructuring would double the scatter-dot FLOPs).
    agg = (jnp.dot(toh_ne[...].astype(jnp.float32), msg[:, :msg_dim],
                   preferred_element_type=jnp.float32)
           + jnp.dot(foh_ne[...].astype(jnp.float32), msg[:, msg_dim:],
                     preferred_element_type=jnp.float32))    # [N, M]

    # residual node-update MLP on concat([agg, ns]) (row split of wn1 is free)
    hh = (jnp.dot(agg, wn1[:msg_dim], preferred_element_type=jnp.float32)
          + jnp.dot(ns, wn1[msg_dim:], preferred_element_type=jnp.float32)
          + bn1)
    hh = jnp.maximum(hh, 0.0)
    ns_sc[...] = ns + (jnp.dot(hh, wn2_ref[0],
                               preferred_element_type=jnp.float32)
                       + bn2)                                # node_update='residual'

    # -------- last layer: gated-sum aggregator --------
    @pl.when(l == n_layers - 1)
    def _():
        ns_fin = ns_sc[...]
        gv = (jnp.dot(ns_fin, wgv_ref[...], preferred_element_type=jnp.float32)
              + bgv_ref[...])                                # [N, 2R] 128 lanes
        gates = jax.nn.sigmoid(gv[:, :rep_dim])
        vals = gv[:, rep_dim:] * gates                       # [N, R]
        n_graphs = out_ref.shape[0]
        n_nodes = ns_fin.shape[0]
        giota = jax.lax.broadcasted_iota(jnp.int32, (n_graphs, n_nodes), 0)
        goh = jnp.where(giota == gidx_ref[...], 1.0, 0.0)    # [G, N]
        out_ref[...] = jnp.dot(goh, vals, preferred_element_type=jnp.float32)


# ------------------------------- wrapper --------------------------------------

def graph_matching_net_forward(params, node_features, edge_features,
                               from_idx, to_idx, graph_idx, n_graphs):
    enc, layers, agg = params['enc'], params['layers'], params['agg']

    d = enc['wn'].shape[1]                 # node_state_dim
    de = enc['we'].shape[1]                # edge_state_dim
    hid = layers[0]['wf1'].shape[1]        # edge-net hidden size
    msg_dim = layers[0]['wf2'].shape[1]    # per-direction message dim
    node_hid = layers[0]['wn1'].shape[1]   # node-update hidden size
    rep_dim = agg['wg'].shape[1]
    n_nodes = node_features.shape[0]
    n_edges = edge_features.shape[0]
    n_layers = len(layers)

    # ---- pack / fuse weights (pure layout work, done once outside the kernel)
    def stack(fn):
        return jnp.stack([fn(lp) for lp in layers], axis=0)

    def block_diag(a, b):
        za = jnp.zeros((a.shape[0], b.shape[1]), a.dtype)
        zb = jnp.zeros((b.shape[0], a.shape[1]), b.dtype)
        return jnp.concatenate([jnp.concatenate([a, za], axis=1),
                                jnp.concatenate([zb, b], axis=1)], axis=0)

    def fused_w1(lp):
        # rows [0:D]   multiply from_states; cols [:H] fwd net / [H:] rev net
        # rows [D:2D]  multiply to_states    (rev net swaps the from/to blocks)
        # rows [2D: ]  multiply encoded edge features
        top = jnp.concatenate([lp['wf1'][:d], lp['wr1'][d:2 * d]], axis=1)
        mid = jnp.concatenate([lp['wf1'][d:2 * d], lp['wr1'][:d]], axis=1)
        bot = jnp.concatenate([lp['wf1'][2 * d:], lp['wr1'][2 * d:]], axis=1)
        return jnp.concatenate([top, mid, bot], axis=0)      # [2D+De, 2H]

    bias_w = max(2 * hid, 2 * msg_dim, node_hid, d)

    def fused_bias(lp):
        def pad(b):
            return jnp.pad(b, ((0, 0), (0, bias_w - b.shape[1])))
        return jnp.concatenate(
            [pad(jnp.concatenate([lp['bf1'], lp['br1']], axis=1)),   # row 0: b1
             pad(jnp.concatenate([lp['bf2'], lp['br2']], axis=1)),   # row 1: b2
             pad(lp['bn1']),                                         # row 2: bn1
             pad(lp['bn2'])], axis=0)                                # row 3: bn2

    w1s = stack(fused_w1)                                     # [L, 2D+De, 2H]
    w2s = stack(lambda lp: block_diag(lp['wf2'], lp['wr2']))  # [L, 2H, 2M]
    wn1s = stack(lambda lp: lp['wn1'])                        # [L, M+D, NH]
    wn2s = stack(lambda lp: lp['wn2'])                        # [L, NH, D]
    bs = stack(fused_bias)                                    # [L, 4, bias_w]

    # aggregator gate|value projections fused into one 2R-wide matmul
    wgv = jnp.concatenate([agg['wg'], agg['wv']], axis=1)     # [D, 2R]
    bgv = jnp.concatenate([agg['bg'], agg['bv']], axis=1)     # [1, 2R]

    # index tensors, both orientations packed into two small arrays
    idx_row = jnp.stack([from_idx, to_idx], axis=1).astype(jnp.int32)  # [E, 2]
    idx_col = jnp.stack([from_idx, to_idx], axis=0).astype(jnp.int32)  # [2, E]
    gidx_row = graph_idx.astype(jnp.int32)[None, :]                    # [1, N]

    def const_spec(shape):
        zeros = (0,) * len(shape)
        return pl.BlockSpec(tuple(shape), lambda l, _z=zeros: _z)

    def layer_spec(full_shape):
        blk = (1,) + tuple(full_shape[1:])
        zeros = (0,) * (len(full_shape) - 1)
        return pl.BlockSpec(blk, lambda l, _z=zeros: (l,) + _z)

    const_inputs = (node_features, edge_features, idx_row, idx_col, gidx_row,
                    enc['wn'], enc['bn'], enc['we'], enc['be'], wgv, bgv)
    layer_inputs = (w1s, w2s, wn1s, wn2s, bs)
    inputs = const_inputs + layer_inputs
    in_specs = ([const_spec(x.shape) for x in const_inputs]
                + [layer_spec(x.shape) for x in layer_inputs])

    # TODO(synk): layer_class=GraphPropLayer (the only dependency provided) has
    # no cross-graph attention term, so graph_idx/n_graphs/similarity only feed
    # the final aggregator, matching the reference semantics here.
    return pl.pallas_call(
        gmn_fused_kernel,
        out_shape=jax.ShapeDtypeStruct((n_graphs, rep_dim), jnp.float32),
        grid_spec=pltpu.PrefetchScalarGridSpec(
            num_scalar_prefetch=0,
            grid=(n_layers,),
            in_specs=in_specs,
            out_specs=pl.BlockSpec((n_graphs, rep_dim), lambda l: (0, 0)),
            scratch_shapes=[
                pltpu.VMEM((n_nodes, d), jnp.float32),         # node states (carried)
                pltpu.VMEM((n_edges, de), jnp.float32),        # encoded edge features
                pltpu.VMEM((n_edges, n_nodes), jnp.bfloat16),  # from one-hot (gather)
                pltpu.VMEM((n_edges, n_nodes), jnp.bfloat16),  # to   one-hot (gather)
                pltpu.VMEM((n_nodes, n_edges), jnp.bfloat16),  # to   one-hot (scatter)
                pltpu.VMEM((n_nodes, n_edges), jnp.bfloat16),  # from one-hot (scatter)
            ]),
        compiler_params=pltpu.CompilerParams(
            dimension_semantics=("arbitrary",),   # layers carry state sequentially
            vmem_limit_bytes=32 * 1024 * 1024),
    )(*inputs)


# ------------------------- pure-JAX reference ---------------------------------

def ref_forward(params, node_features, edge_features, from_idx, to_idx,
                graph_idx, n_graphs):
    ns = node_features @ params['enc']['wn'] + params['enc']['bn']
    ef = edge_features @ params['enc']['we'] + params['enc']['be']
    n_nodes = ns.shape[0]
    for lp in params['layers']:
        fs, ts = ns[from_idx], ns[to_idx]
        x = jnp.concatenate([fs, ts, ef], -1)
        m = jnp.maximum(x @ lp['wf1'] + lp['bf1'], 0.0) @ lp['wf2'] + lp['bf2']
        agg = jnp.zeros((n_nodes, m.shape[1]), jnp.float32).at[to_idx].add(m)
        xr = jnp.concatenate([ts, fs, ef], -1)
        mr = jnp.maximum(xr @ lp['wr1'] + lp['br1'], 0.0) @ lp['wr2'] + lp['br2']
        agg = agg + jnp.zeros_like(agg).at[from_idx].add(mr)
        nu = jnp.concatenate([agg, ns], -1)
        ns = ns + (jnp.maximum(nu @ lp['wn1'] + lp['bn1'], 0.0) @ lp['wn2'] + lp['bn2'])
    gates = jax.nn.sigmoid(ns @ params['agg']['wg'] + params['agg']['bg'])
    vals = (ns @ params['agg']['wv'] + params['agg']['bv']) * gates
    return jnp.zeros((n_graphs, vals.shape[1]), jnp.float32).at[graph_idx].add(vals)


# --------------------------------- main ----------------------------------------

def init_linear(key, fan_in, fan_out, scale=None):
    kw, kb = jax.random.split(key)
    lim = 1.0 / (fan_in ** 0.5)
    w = jax.random.uniform(kw, (fan_in, fan_out), jnp.float32, -lim, lim)
    b = jax.random.uniform(kb, (1, fan_out), jnp.float32, -lim, lim)
    if scale is not None:
        w, b = w * scale, b * scale
    return w, b


if __name__ == "__main__":
    key = jax.random.PRNGKey(0)

    # small shapes consistent with the module
    n_nodes, n_edges, n_graphs = 16, 32, 4          # 2 graph pairs
    node_feat_dim, edge_feat_dim = 8, 8
    node_state_dim, edge_state_dim = 32, 16
    edge_hidden = [64, 2 * node_state_dim]          # message dim = 2*D (GMN convention)
    node_hidden = [64]
    graph_rep_dim = 64
    n_prop_layers = 3
    edge_net_init_scale = 0.1

    keys = jax.random.split(key, 16)

    # encoder (injected module in the original; one Linear per tensor here)
    wn, bn = init_linear(keys[0], node_feat_dim, node_state_dim)
    we, be = init_linear(keys[1], edge_feat_dim, edge_state_dim)
    enc = dict(wn=wn, bn=bn, we=we, be=be)

    # propagation layers (share_prop_params=False -> independent params)
    layers = []
    edge_in = 2 * node_state_dim + edge_state_dim
    node_in = edge_hidden[-1] + node_state_dim
    for i in range(n_prop_layers):
        lk = jax.random.split(keys[2 + i], 6)
        wf1, bf1 = init_linear(lk[0], edge_in, edge_hidden[0], scale=edge_net_init_scale)
        wf2, bf2 = init_linear(lk[1], edge_hidden[0], edge_hidden[1], scale=edge_net_init_scale)
        wr1, br1 = init_linear(lk[2], edge_in, edge_hidden[0], scale=edge_net_init_scale)
        wr2, br2 = init_linear(lk[3], edge_hidden[0], edge_hidden[1], scale=edge_net_init_scale)
        wn1, bn1 = init_linear(lk[4], node_in, node_hidden[0])
        wn2, bn2 = init_linear(lk[5], node_hidden[0], node_state_dim)
        layers.append(dict(wf1=wf1, bf1=bf1, wf2=wf2, bf2=bf2,
                           wr1=wr1, br1=br1, wr2=wr2, br2=br2,
                           wn1=wn1, bn1=bn1, wn2=wn2, bn2=bn2))

    # aggregator (injected module; standard GMN gated-sum aggregator)
    wg, bg = init_linear(keys[8], node_state_dim, graph_rep_dim)
    wv, bv = init_linear(keys[9], node_state_dim, graph_rep_dim)
    params = dict(enc=enc, layers=layers, agg=dict(wg=wg, bg=bg, wv=wv, bv=bv))

    # deterministic synthetic graph batch (edges stay within their own graph)
    dk = jax.random.split(keys[10], 4)
    node_features = jax.random.normal(dk[0], (n_nodes, node_feat_dim), jnp.float32)
    edge_features = jax.random.normal(dk[1], (n_edges, edge_feat_dim), jnp.float32)
    nodes_per_graph = n_nodes // n_graphs
    edges_per_graph = n_edges // n_graphs
    graph_idx = jnp.repeat(jnp.arange(n_graphs, dtype=jnp.int32), nodes_per_graph)
    offs = (jnp.arange(n_graphs, dtype=jnp.int32) * nodes_per_graph)[:, None]
    from_idx = (jax.random.randint(dk[2], (n_graphs, edges_per_graph), 0, nodes_per_graph)
                + offs).reshape(-1).astype(jnp.int32)
    to_idx = (jax.random.randint(dk[3], (n_graphs, edges_per_graph), 0, nodes_per_graph)
              + offs).reshape(-1).astype(jnp.int32)

    out = graph_matching_net_forward(params, node_features, edge_features,
                                     from_idx, to_idx, graph_idx, n_graphs)
    out = jax.block_until_ready(out)

    ref = ref_forward(params, node_features, edge_features, from_idx, to_idx,
                      graph_idx, n_graphs)
    assert out.shape == (n_graphs, graph_rep_dim)
    assert jnp.allclose(out, ref, atol=1e-4, rtol=1e-4), \
        float(jnp.max(jnp.abs(out - ref)))
    print("KERNEL_OK")
</pallas_src>

<mosaic_0001>
module attributes {stable_mosaic.version = 11 : i64} {
  func.func @gmn_fused_kernel(%arg0: i32, %arg1: memref<16x8xf32, #tpu.memory_space<vmem>>, %arg2: memref<32x8xf32, #tpu.memory_space<vmem>>, %arg3: memref<32x2xi32, #tpu.memory_space<vmem>>, %arg4: memref<2x32xi32, #tpu.memory_space<vmem>>, %arg5: memref<1x16xi32, #tpu.memory_space<vmem>>, %arg6: memref<8x32xf32, #tpu.memory_space<vmem>>, %arg7: memref<1x32xf32, #tpu.memory_space<vmem>>, %arg8: memref<8x16xf32, #tpu.memory_space<vmem>>, %arg9: memref<1x16xf32, #tpu.memory_space<vmem>>, %arg10: memref<32x128xf32, #tpu.memory_space<vmem>>, %arg11: memref<1x128xf32, #tpu.memory_space<vmem>>, %arg12: memref<1x80x128xf32, #tpu.memory_space<vmem>>, %arg13: memref<1x128x128xf32, #tpu.memory_space<vmem>>, %arg14: memref<1x96x64xf32, #tpu.memory_space<vmem>>, %arg15: memref<1x64x32xf32, #tpu.memory_space<vmem>>, %arg16: memref<1x4x128xf32, #tpu.memory_space<vmem>>, %arg17: memref<4x64xf32, #tpu.memory_space<vmem>>, %arg18: memref<16x32xf32, #tpu.memory_space<vmem>>, %arg19: memref<32x16xf32, #tpu.memory_space<vmem>>, %arg20: memref<32x16xbf16, #tpu.memory_space<vmem>>, %arg21: memref<32x16xbf16, #tpu.memory_space<vmem>>, %arg22: memref<16x32xbf16, #tpu.memory_space<vmem>>, %arg23: memref<16x32xbf16, #tpu.memory_space<vmem>>) attributes {dimension_semantics = [#tpu.dimension_semantics<arbitrary>], iteration_bounds = array<i64: 3>, scalar_prefetch = 0 : i64, scratch_operands = 6 : i64, tpu.core_type = #tpu.core_type<tc>, window_params = [{pipeline_mode = #tpu.pipeline_mode<synchronous>, transform_indices = @transform_0, window_bounds = array<i64: 16, 8>}, {pipeline_mode = #tpu.pipeline_mode<synchronous>, transform_indices = @transform_1, window_bounds = array<i64: 32, 8>}, {pipeline_mode = #tpu.pipeline_mode<synchronous>, transform_indices = @transform_2, window_bounds = array<i64: 32, 2>}, {pipeline_mode = #tpu.pipeline_mode<synchronous>, transform_indices = @transform_3, window_bounds = array<i64: 2, 32>}, {pipeline_mode = #tpu.pipeline_mode<synchronous>, transform_indices = @transform_4, window_bounds = array<i64: 1, 16>}, {pipeline_mode = #tpu.pipeline_mode<synchronous>, transform_indices = @transform_5, window_bounds = array<i64: 8, 32>}, {pipeline_mode = #tpu.pipeline_mode<synchronous>, transform_indices = @transform_6, window_bounds = array<i64: 1, 32>}, {pipeline_mode = #tpu.pipeline_mode<synchronous>, transform_indices = @transform_7, window_bounds = array<i64: 8, 16>}, {pipeline_mode = #tpu.pipeline_mode<synchronous>, transform_indices = @transform_8, window_bounds = array<i64: 1, 16>}, {pipeline_mode = #tpu.pipeline_mode<synchronous>, transform_indices = @transform_9, window_bounds = array<i64: 32, 128>}, {pipeline_mode = #tpu.pipeline_mode<synchronous>, transform_indices = @transform_10, window_bounds = array<i64: 1, 128>}, {transform_indices = @transform_11, window_bounds = array<i64: 1, 80, 128>}, {transform_indices = @transform_12, window_bounds = array<i64: 1, 128, 128>}, {transform_indices = @transform_13, window_bounds = array<i64: 1, 96, 64>}, {transform_indices = @transform_14, window_bounds = array<i64: 1, 64, 32>}, {transform_indices = @transform_15, window_bounds = array<i64: 1, 4, 128>}, {pipeline_mode = #tpu.pipeline_mode<synchronous>, transform_indices = @transform_16, window_bounds = array<i64: 4, 64>}]} {
    %c0_i32 = arith.constant 0 : i32
    %0 = arith.cmpi eq, %arg0, %c0_i32 : i32
    %1 = arith.extui %0 : i1 to i32
    %c0_i32_0 = arith.constant 0 : i32
    %2 = arith.cmpi ne, %1, %c0_i32_0 : i32
    scf.if %2 {
      %c0_42 = arith.constant 0 : index
      %c0_43 = arith.constant 0 : index
      %66 = vector.load %arg1[%c0_42, %c0_43] : memref<16x8xf32, #tpu.memory_space<vmem>>, vector<16x8xf32>
      %c0_44 = arith.constant 0 : index
      %c0_45 = arith.constant 0 : index
      %67 = vector.load %arg6[%c0_44, %c0_45] : memref<8x32xf32, #tpu.memory_space<vmem>>, vector<8x32xf32>
      %cst_46 = arith.constant dense<0.000000e+00> : vector<16x32xf32>
      %68 = tpu.matmul %66, %67, %cst_46 {dimension_numbers = #tpu.dot_dimension_numbers<[1], [0], [0], [1], [0, 0, 1, 1], [], []>} : vector<16x8xf32>, vector<8x32xf32>, vector<16x32xf32> -> vector<16x32xf32>
      %c0_47 = arith.constant 0 : index
      %c0_48 = arith.constant 0 : index
      %69 = vector.load %arg7[%c0_47, %c0_48] : memref<1x32xf32, #tpu.memory_space<vmem>>, vector<1x32xf32>
      %70 = vector.broadcast %69 : vector<1x32xf32> to vector<16x32xf32>
      %71 = arith.addf %68, %70 : vector<16x32xf32>
      %c0_49 = arith.constant 0 : index
      %c0_50 = arith.constant 0 : index
      %72 = vector.load %arg18[%c0_49, %c0_50] : memref<16x32xf32, #tpu.memory_space<vmem>>, vector<16x32xf32>
      tpu.vector_store %arg18[%c0_49, %c0_50], %71 {strides = array<i32>} : memref<16x32xf32, #tpu.memory_space<vmem>>, vector<16x32xf32>,
      %c0_51 = arith.constant 0 : index
      %c0_52 = arith.constant 0 : index
      %73 = vector.load %arg2[%c0_51, %c0_52] : memref<32x8xf32, #tpu.memory_space<vmem>>, vector<32x8xf32>
      %c0_53 = arith.constant 0 : index
      %c0_54 = arith.constant 0 : index
      %74 = vector.load %arg8[%c0_53, %c0_54] : memref<8x16xf32, #tpu.memory_space<vmem>>, vector<8x16xf32>
      %cst_55 = arith.constant dense<0.000000e+00> : vector<32x16xf32>
      %75 = tpu.matmul %73, %74, %cst_55 {dimension_numbers = #tpu.dot_dimension_numbers<[1], [0], [0], [1], [0, 0, 1, 1], [], []>} : vector<32x8xf32>, vector<8x16xf32>, vector<32x16xf32> -> vector<32x16xf32>
      %c0_56 = arith.constant 0 : index
      %c0_57 = arith.constant 0 : index
      %76 = vector.load %arg9[%c0_56, %c0_57] : memref<1x16xf32, #tpu.memory_space<vmem>>, vector<1x16xf32>
      %77 = vector.broadcast %76 : vector<1x16xf32> to vector<32x16xf32>
      %78 = arith.addf %75, %77 : vector<32x16xf32>
      %c0_58 = arith.constant 0 : index
      %c0_59 = arith.constant 0 : index
      %79 = vector.load %arg19[%c0_58, %c0_59] : memref<32x16xf32, #tpu.memory_space<vmem>>, vector<32x16xf32>
      tpu.vector_store %arg19[%c0_58, %c0_59], %78 {strides = array<i32>} : memref<32x16xf32, #tpu.memory_space<vmem>>, vector<32x16xf32>,
      %c0_60 = arith.constant 0 : index
      %c0_61 = arith.constant 0 : index
      %80 = vector.load %arg3[%c0_60, %c0_61] : memref<32x2xi32, #tpu.memory_space<vmem>>, vector<32x1xi32>
      %c0_62 = arith.constant 0 : index
      %c1 = arith.constant 1 : index
      %81 = vector.load %arg3[%c0_62, %c1] : memref<32x2xi32, #tpu.memory_space<vmem>>, vector<32x1xi32>
      %82 = tpu.iota {dimensions = array<i32: 1>} : vector<32x16xi32>
      %83 = vector.broadcast %80 : vector<32x1xi32> to vector<32x16xi32>
      %84 = arith.cmpi eq, %82, %83 : vector<32x16xi32>
      %cst_63 = arith.constant 1.000000e+00 : f32
      %cst_64 = arith.constant 0.000000e+00 : f32
      %85 = vector.broadcast %cst_63 : f32 to vector<32x16xf32>
      %86 = vector.broadcast %cst_64 : f32 to vector<32x16xf32>
      %87 = arith.select %84, %85, %86 : vector<32x16xi1>, vector<32x16xf32>
      %88 = arith.truncf %87 : vector<32x16xf32> to vector<32x16xbf16>
      %c0_65 = arith.constant 0 : index
      %c0_66 = arith.constant 0 : index
      %89 = vector.load %arg20[%c0_65, %c0_66] : memref<32x16xbf16, #tpu.memory_space<vmem>>, vector<32x16xbf16>
      tpu.vector_store %arg20[%c0_65, %c0_66], %88 {strides = array<i32>} : memref<32x16xbf16, #tpu.memory_space<vmem>>, vector<32x16xbf16>,
      %90 = vector.broadcast %81 : vector<32x1xi32> to vector<32x16xi32>
      %91 = arith.cmpi eq, %82, %90 : vector<32x16xi32>
      %cst_67 = arith.constant 1.000000e+00 : f32
      %cst_68 = arith.constant 0.000000e+00 : f32
      %92 = vector.broadcast %cst_67 : f32 to vector<32x16xf32>
      %93 = vector.broadcast %cst_68 : f32 to vector<32x16xf32>
      %94 = arith.select %91, %92, %93 : vector<32x16xi1>, vector<32x16xf32>
      %95 = arith.truncf %94 : vector<32x16xf32> to vector<32x16xbf16>
      %c0_69 = arith.constant 0 : index
      %c0_70 = arith.constant 0 : index
      %96 = vector.load %arg21[%c0_69, %c0_70] : memref<32x16xbf16, #tpu.memory_space<vmem>>, vector<32x16xbf16>
      tpu.vector_store %arg21[%c0_69, %c0_70], %95 {strides = array<i32>} : memref<32x16xbf16, #tpu.memory_space<vmem>>, vector<32x16xbf16>,
      %c0_71 = arith.constant 0 : index
      %c0_72 = arith.constant 0 : index
      %97 = vector.load %arg4[%c0_71, %c0_72] : memref<2x32xi32, #tpu.memory_space<vmem>>, vector<1x32xi32>
      %c1_73 = arith.constant 1 : index
      %c0_74 = arith.constant 0 : index
      %98 = vector.load %arg4[%c1_73, %c0_74] : memref<2x32xi32, #tpu.memory_space<vmem>>, vector<1x32xi32>
      %99 = tpu.iota {dimensions = array<i32: 0>} : vector<16x32xi32>
      %100 = vector.broadcast %98 : vector<1x32xi32> to vector<16x32xi32>
      %101 = arith.cmpi eq, %99, %100 : vector<16x32xi32>
      %cst_75 = arith.constant 1.000000e+00 : f32
      %cst_76 = arith.constant 0.000000e+00 : f32
      %102 = vector.broadcast %cst_75 : f32 to vector<16x32xf32>
      %103 = vector.broadcast %cst_76 : f32 to vector<16x32xf32>
      %104 = arith.select %101, %102, %103 : vector<16x32xi1>, vector<16x32xf32>
      %105 = arith.truncf %104 : vector<16x32xf32> to vector<16x32xbf16>
      %c0_77 = arith.constant 0 : index
      %c0_78 = arith.constant 0 : index
      %106 = vector.load %arg22[%c0_77, %c0_78] : memref<16x32xbf16, #tpu.memory_space<vmem>>, vector<16x32xbf16>
      tpu.vector_store %arg22[%c0_77, %c0_78], %105 {strides = array<i32>} : memref<16x32xbf16, #tpu.memory_space<vmem>>, vector<16x32xbf16>,
      %107 = vector.broadcast %97 : vector<1x32xi32> to vector<16x32xi32>
      %108 = arith.cmpi eq, %99, %107 : vector<16x32xi32>
      %cst_79 = arith.constant 1.000000e+00 : f32
      %cst_80 = arith.constant 0.000000e+00 : f32
      %109 = vector.broadcast %cst_79 : f32 to vector<16x32xf32>
      %110 = vector.broadcast %cst_80 : f32 to vector<16x32xf32>
      %111 = arith.select %108, %109, %110 : vector<16x32xi1>, vector<16x32xf32>
      %112 = arith.truncf %111 : vector<16x32xf32> to vector<16x32xbf16>
      %c0_81 = arith.constant 0 : index
      %c0_82 = arith.constant 0 : index
      %113 = vector.load %arg23[%c0_81, %c0_82] : memref<16x32xbf16, #tpu.memory_space<vmem>>, vector<16x32xbf16>
      tpu.vector_store %arg23[%c0_81, %c0_82], %112 {strides = array<i32>} : memref<16x32xbf16, #tpu.memory_space<vmem>>, vector<16x32xbf16>,
      %cst_83 = arith.constant 0.000000e+00 : f32
      %114 = vector.broadcast %cst_83 : f32 to vector<4x64xf32>
      %c0_84 = arith.constant 0 : index
      %c0_85 = arith.constant 0 : index
      %115 = vector.load %arg17[%c0_84, %c0_85] : memref<4x64xf32, #tpu.memory_space<vmem>>, vector<4x64xf32>
      tpu.vector_store %arg17[%c0_84, %c0_85], %114 {strides = array<i32>} : memref<4x64xf32, #tpu.memory_space<vmem>>, vector<4x64xf32>,
    } else {
    }
    %c0 = arith.constant 0 : index
    %c0_1 = arith.constant 0 : index
    %3 = vector.load %arg18[%c0, %c0_1] : memref<16x32xf32, #tpu.memory_space<vmem>>, vector<16x32xf32>
    %c0_2 = arith.constant 0 : index
    %c0_3 = arith.constant 0 : index
    %4 = vector.load %arg19[%c0_2, %c0_3] : memref<32x16xf32, #tpu.memory_space<vmem>>, vector<32x16xf32>
    %c0_4 = arith.constant 0 : index
    %c0_5 = arith.constant 0 : index
    %c0_6 = arith.constant 0 : index
    %5 = vector.load %arg12[%c0_4, %c0_5, %c0_6] : memref<1x80x128xf32, #tpu.memory_space<vmem>>, vector<1x80x128xf32>
    %6 = vector.shape_cast %5 : vector<1x80x128xf32> to vector<80x128xf32>
    %c0_7 = arith.constant 0 : index
    %c0_8 = arith.constant 0 : index
    %c0_9 = arith.constant 0 : index
    %7 = vector.load %arg14[%c0_7, %c0_8, %c0_9] : memref<1x96x64xf32, #tpu.memory_space<vmem>>, vector<1x96x64xf32>
    %8 = vector.shape_cast %7 : vector<1x96x64xf32> to vector<96x64xf32>
    %c0_10 = arith.constant 0 : index
    %c0_11 = arith.constant 0 : index
    %c0_12 = arith.constant 0 : index
    %9 = vector.load %arg16[%c0_10, %c0_11, %c0_12] : memref<1x4x128xf32, #tpu.memory_space<vmem>>, vector<1x4x128xf32>
    %10 = vector.shape_cast %9 : vector<1x4x128xf32> to vector<4x128xf32>
    %11 = vector.extract_strided_slice %10 {offsets = [0, 0], sizes = [1, 128], strides = [1, 1]} : vector<4x128xf32> to vector<1x128xf32>
    %12 = vector.extract_strided_slice %10 {offsets = [1, 0], sizes = [1, 128], strides = [1, 1]} : vector<4x128xf32> to vector<1x128xf32>
    %13 = vector.extract_strided_slice %10 {offsets = [2, 0], sizes = [1, 64], strides = [1, 1]} : vector<4x128xf32> to vector<1x64xf32>
    %14 = vector.extract_strided_slice %10 {offsets = [3, 0], sizes = [1, 32], strides = [1, 1]} : vector<4x128xf32> to vector<1x32xf32>
    %c0_13 = arith.constant 0 : index
    %c0_14 = arith.constant 0 : index
    %15 = vector.load %arg20[%c0_13, %c0_14] : memref<32x16xbf16, #tpu.memory_space<vmem>>, vector<32x16xbf16>
    %16 = arith.extf %15 : vector<32x16xbf16> to vector<32x16xf32>
    %cst = arith.constant dense<0.000000e+00> : vector<32x32xf32>
    %17 = tpu.matmul %16, %3, %cst {dimension_numbers = #tpu.dot_dimension_numbers<[1], [0], [0], [1], [0, 0, 1, 1], [], []>} : vector<32x16xf32>, vector<16x32xf32>, vector<32x32xf32> -> vector<32x32xf32>
    %c0_15 = arith.constant 0 : index
    %c0_16 = arith.constant 0 : index
    %18 = vector.load %arg21[%c0_15, %c0_16] : memref<32x16xbf16, #tpu.memory_space<vmem>>, vector<32x16xbf16>
    %19 = arith.extf %18 : vector<32x16xbf16> to vector<32x16xf32>
    %cst_17 = arith.constant dense<0.000000e+00> : vector<32x32xf32>
    %20 = tpu.matmul %19, %3, %cst_17 {dimension_numbers = #tpu.dot_dimension_numbers<[1], [0], [0], [1], [0, 0, 1, 1], [], []>} : vector<32x16xf32>, vector<16x32xf32>, vector<32x32xf32> -> vector<32x32xf32>
    %21 = vector.extract_strided_slice %6 {offsets = [0, 0], sizes = [32, 128], strides = [1, 1]} : vector<80x128xf32> to vector<32x128xf32>
    %cst_18 = arith.constant dense<0.000000e+00> : vector<32x128xf32>
    %22 = tpu.matmul %17, %21, %cst_18 {dimension_numbers = #tpu.dot_dimension_numbers<[1], [0], [0], [1], [0, 0, 1, 1], [], []>} : vector<32x32xf32>, vector<32x128xf32>, vector<32x128xf32> -> vector<32x128xf32>
    %23 = vector.extract_strided_slice %6 {offsets = [32, 0], sizes = [32, 128], strides = [1, 1]} : vector<80x128xf32> to vector<32x128xf32>
    %cst_19 = arith.constant dense<0.000000e+00> : vector<32x128xf32>
    %24 = tpu.matmul %20, %23, %cst_19 {dimension_numbers = #tpu.dot_dimension_numbers<[1], [0], [0], [1], [0, 0, 1, 1], [], []>} : vector<32x32xf32>, vector<32x128xf32>, vector<32x128xf32> -> vector<32x128xf32>
    %25 = arith.addf %22, %24 : vector<32x128xf32>
    %26 = vector.extract_strided_slice %6 {offsets = [64, 0], sizes = [16, 128], strides = [1, 1]} : vector<80x128xf32> to vector<16x128xf32>
    %cst_20 = arith.constant dense<0.000000e+00> : vector<32x128xf32>
    %27 = tpu.matmul %4, %26, %cst_20 {dimension_numbers = #tpu.dot_dimension_numbers<[1], [0], [0], [1], [0, 0, 1, 1], [], []>} : vector<32x16xf32>, vector<16x128xf32>, vector<32x128xf32> -> vector<32x128xf32>
    %28 = arith.addf %25, %27 : vector<32x128xf32>
    %29 = vector.broadcast %11 : vector<1x128xf32> to vector<32x128xf32>
    %30 = arith.addf %28, %29 : vector<32x128xf32>
    %cst_21 = arith.constant 0.000000e+00 : f32
    %31 = vector.broadcast %cst_21 : f32 to vector<32x128xf32>
    %32 = arith.maximumf %30, %31 : vector<32x128xf32>
    %c0_22 = arith.constant 0 : index
    %c0_23 = arith.constant 0 : index
    %c0_24 = arith.constant 0 : index
    %33 = vector.load %arg13[%c0_22, %c0_23, %c0_24] : memref<1x128x128xf32, #tpu.memory_space<vmem>>, vector<1x128x128xf32>
    %34 = vector.shape_cast %33 : vector<1x128x128xf32> to vector<128x128xf32>
    %cst_25 = arith.constant dense<0.000000e+00> : vector<32x128xf32>
    %35 = tpu.matmul %32, %34, %cst_25 {dimension_numbers = #tpu.dot_dimension_numbers<[1], [0], [0], [1], [0, 0, 1, 1], [], []>} : vector<32x128xf32>, vector<128x128xf32>, vector<32x128xf32> -> vector<32x128xf32>
    %36 = vector.broadcast %12 : vector<1x128xf32> to vector<32x128xf32>
    %37 = arith.addf %35, %36 : vector<32x128xf32>
    %c0_26 = arith.constant 0 : index
    %c0_27 = arith.constant 0 : index
    %38 = vector.load %arg22[%c0_26, %c0_27] : memref<16x32xbf16, #tpu.memory_space<vmem>>, vector<16x32xbf16>
    %39 = arith.extf %38 : vector<16x32xbf16> to vector<16x32xf32>
    %40 = vector.extract_strided_slice %37 {offsets = [0, 0], sizes = [32, 64], strides = [1, 1]} : vector<32x128xf32> to vector<32x64xf32>
    %cst_28 = arith.constant dense<0.000000e+00> : vector<16x64xf32>
    %41 = tpu.matmul %39, %40, %cst_28 {dimension_numbers = #tpu.dot_dimension_numbers<[1], [0], [0], [1], [0, 0, 1, 1], [], []>} : vector<16x32xf32>, vector<32x64xf32>, vector<16x64xf32> -> vector<16x64xf32>
    %c0_29 = arith.constant 0 : index
    %c0_30 = arith.constant 0 : index
    %42 = vector.load %arg23[%c0_29, %c0_30] : memref<16x32xbf16, #tpu.memory_space<vmem>>, vector<16x32xbf16>
    %43 = arith.extf %42 : vector<16x32xbf16> to vector<16x32xf32>
    %44 = vector.extract_strided_slice %37 {offsets = [0, 64], sizes = [32, 64], strides = [1, 1]} : vector<32x128xf32> to vector<32x64xf32>
    %cst_31 = arith.constant dense<0.000000e+00> : vector<16x64xf32>
    %45 = tpu.matmul %43, %44, %cst_31 {dimension_numbers = #tpu.dot_dimension_numbers<[1], [0], [0], [1], [0, 0, 1, 1], [], []>} : vector<16x32xf32>, vector<32x64xf32>, vector<16x64xf32> -> vector<16x64xf32>
    %46 = arith.addf %41, %45 : vector<16x64xf32>
    %47 = vector.extract_strided_slice %8 {offsets = [0, 0], sizes = [64, 64], strides = [1, 1]} : vector<96x64xf32> to vector<64x64xf32>
    %cst_32 = arith.constant dense<0.000000e+00> : vector<16x64xf32>
    %48 = tpu.matmul %46, %47, %cst_32 {dimension_numbers = #tpu.dot_dimension_numbers<[1], [0], [0], [1], [0, 0, 1, 1], [], []>} : vector<16x64xf32>, vector<64x64xf32>, vector<16x64xf32> -> vector<16x64xf32>
    %49 = vector.extract_strided_slice %8 {offsets = [64, 0], sizes = [32, 64], strides = [1, 1]} : vector<96x64xf32> to vector<32x64xf32>
    %cst_33 = arith.constant dense<0.000000e+00> : vector<16x64xf32>
    %50 = tpu.matmul %3, %49, %cst_33 {dimension_numbers = #tpu.dot_dimension_numbers<[1], [0], [0], [1], [0, 0, 1, 1], [], []>} : vector<16x32xf32>, vector<32x64xf32>, vector<16x64xf32> -> vector<16x64xf32>
    %51 = arith.addf %48, %50 : vector<16x64xf32>
    %52 = vector.broadcast %13 : vector<1x64xf32> to vector<16x64xf32>
    %53 = arith.addf %51, %52 : vector<16x64xf32>
    %cst_34 = arith.constant 0.000000e+00 : f32
    %54 = vector.broadcast %cst_34 : f32 to vector<16x64xf32>
    %55 = arith.maximumf %53, %54 : vector<16x64xf32>
    %c0_35 = arith.constant 0 : index
    %c0_36 = arith.constant 0 : index
    %c0_37 = arith.constant 0 : index
    %56 = vector.load %arg15[%c0_35, %c0_36, %c0_37] : memref<1x64x32xf32, #tpu.memory_space<vmem>>, vector<1x64x32xf32>
    %57 = vector.shape_cast %56 : vector<1x64x32xf32> to vector<64x32xf32>
    %cst_38 = arith.constant dense<0.000000e+00> : vector<16x32xf32>
    %58 = tpu.matmul %55, %57, %cst_38 {dimension_numbers = #tpu.dot_dimension_numbers<[1], [0], [0], [1], [0, 0, 1, 1], [], []>} : vector<16x64xf32>, vector<64x32xf32>, vector<16x32xf32> -> vector<16x32xf32>
    %59 = vector.broadcast %14 : vector<1x32xf32> to vector<16x32xf32>
    %60 = arith.addf %58, %59 : vector<16x32xf32>
    %61 = arith.addf %3, %60 : vector<16x32xf32>
    %c0_39 = arith.constant 0 : index
    %c0_40 = arith.constant 0 : index
    %62 = vector.load %arg18[%c0_39, %c0_40] : memref<16x32xf32, #tpu.memory_space<vmem>>, vector<16x32xf32>
    tpu.vector_store %arg18[%c0_39, %c0_40], %61 {strides = array<i32>} : memref<16x32xf32, #tpu.memory_space<vmem>>, vector<16x32xf32>,
    %c2_i32 = arith.constant 2 : i32
    %63 = arith.cmpi eq, %arg0, %c2_i32 : i32
    %64 = arith.extui %63 : i1 to i32
    %c0_i32_41 = arith.constant 0 : i32
    %65 = arith.cmpi ne, %64, %c0_i32_41 : i32
    scf.if %65 {
      %c0_42 = arith.constant 0 : index
      %c0_43 = arith.constant 0 : index
      %66 = vector.load %arg18[%c0_42, %c0_43] : memref<16x32xf32, #tpu.memory_space<vmem>>, vector<16x32xf32>
      %c0_44 = arith.constant 0 : index
      %c0_45 = arith.constant 0 : index
      %67 = vector.load %arg10[%c0_44, %c0_45] : memref<32x128xf32, #tpu.memory_space<vmem>>, vector<32x128xf32>
      %cst_46 = arith.constant dense<0.000000e+00> : vector<16x128xf32>
      %68 = tpu.matmul %66, %67, %cst_46 {dimension_numbers = #tpu.dot_dimension_numbers<[1], [0], [0], [1], [0, 0, 1, 1], [], []>} : vector<16x32xf32>, vector<32x128xf32>, vector<16x128xf32> -> vector<16x128xf32>
      %c0_47 = arith.constant 0 : index
      %c0_48 = arith.constant 0 : index
      %69 = vector.load %arg11[%c0_47, %c0_48] : memref<1x128xf32, #tpu.memory_space<vmem>>, vector<1x128xf32>
      %70 = vector.broadcast %69 : vector<1x128xf32> to vector<16x128xf32>
      %71 = arith.addf %68, %70 : vector<16x128xf32>
      %72 = vector.extract_strided_slice %71 {offsets = [0, 0], sizes = [16, 64], strides = [1, 1]} : vector<16x128xf32> to vector<16x64xf32>
      %73 = arith.negf %72 : vector<16x64xf32>
      %74 = math.exp %73 : vector<16x64xf32>
      %cst_49 = arith.constant 1.000000e+00 : f32
      %75 = vector.broadcast %cst_49 : f32 to vector<16x64xf32>
      %76 = arith.addf %75, %74 : vector<16x64xf32>
      %77 = arith.divf %75, %76 : vector<16x64xf32>
      %78 = vector.extract_strided_slice %71 {offsets = [0, 64], sizes = [16, 64], strides = [1, 1]} : vector<16x128xf32> to vector<16x64xf32>
      %79 = arith.mulf %78, %77 : vector<16x64xf32>
      %80 = tpu.iota {dimensions = array<i32: 0>} : vector<4x16xi32>
      %c0_50 = arith.constant 0 : index
      %c0_51 = arith.constant 0 : index
      %81 = vector.load %arg5[%c0_50, %c0_51] : memref<1x16xi32, #tpu.memory_space<vmem>>, vector<1x16xi32>
      %82 = vector.broadcast %81 : vector<1x16xi32> to vector<4x16xi32>
      %83 = arith.cmpi eq, %80, %82 : vector<4x16xi32>
      %cst_52 = arith.constant 1.000000e+00 : f32
      %cst_53 = arith.constant 0.000000e+00 : f32
      %84 = vector.broadcast %cst_52 : f32 to vector<4x16xf32>
      %85 = vector.broadcast %cst_53 : f32 to vector<4x16xf32>
      %86 = arith.select %83, %84, %85 : vector<4x16xi1>, vector<4x16xf32>
      %cst_54 = arith.constant dense<0.000000e+00> : vector<4x64xf32>
      %87 = tpu.matmul %86, %79, %cst_54 {dimension_numbers = #tpu.dot_dimension_numbers<[1], [0], [0], [1], [0, 0, 1, 1], [], []>} : vector<4x16xf32>, vector<16x64xf32>, vector<4x64xf32> -> vector<4x64xf32>
      %c0_55 = arith.constant 0 : index
      %c0_56 = arith.constant 0 : index
      %88 = vector.load %arg17[%c0_55, %c0_56] : memref<4x64xf32, #tpu.memory_space<vmem>>, vector<4x64xf32>
      tpu.vector_store %arg17[%c0_55, %c0_56], %87 {strides = array<i32>} : memref<4x64xf32, #tpu.memory_space<vmem>>, vector<4x64xf32>,
    } else {
    }
    return
  }
  func.func @transform_0(%arg0: i32) -> (i32, i32) {
    %c0_i32 = arith.constant 0 : i32
    %c0_i32_0 = arith.constant 0 : i32
    %c0_i32_1 = arith.constant 0 : i32
    return %c0_i32, %c0_i32_0 : i32, i32
  }
  func.func @transform_1(%arg0: i32) -> (i32, i32) {
    %c0_i32 = arith.constant 0 : i32
    %c0_i32_0 = arith.constant 0 : i32
    %c0_i32_1 = arith.constant 0 : i32
    return %c0_i32, %c0_i32_0 : i32, i32
  }
  func.func @transform_2(%arg0: i32) -> (i32, i32) {
    %c0_i32 = arith.constant 0 : i32
    %c0_i32_0 = arith.constant 0 : i32
    %c0_i32_1 = arith.constant 0 : i32
    return %c0_i32, %c0_i32_0 : i32, i32
  }
  func.func @transform_3(%arg0: i32) -> (i32, i32) {
    %c0_i32 = arith.constant 0 : i32
    %c0_i32_0 = arith.constant 0 : i32
    %c0_i32_1 = arith.constant 0 : i32
    return %c0_i32, %c0_i32_0 : i32, i32
  }
  func.func @transform_4(%arg0: i32) -> (i32, i32) {
    %c0_i32 = arith.constant 0 : i32
    %c0_i32_0 = arith.constant 0 : i32
    %c0_i32_1 = arith.constant 0 : i32
    return %c0_i32, %c0_i32_0 : i32, i32
  }
  func.func @transform_5(%arg0: i32) -> (i32, i32) {
    %c0_i32 = arith.constant 0 : i32
    %c0_i32_0 = arith.constant 0 : i32
    %c0_i32_1 = arith.constant 0 : i32
    return %c0_i32, %c0_i32_0 : i32, i32
  }
  func.func @transform_6(%arg0: i32) -> (i32, i32) {
    %c0_i32 = arith.constant 0 : i32
    %c0_i32_0 = arith.constant 0 : i32
    %c0_i32_1 = arith.constant 0 : i32
    return %c0_i32, %c0_i32_0 : i32, i32
  }
  func.func @transform_7(%arg0: i32) -> (i32, i32) {
    %c0_i32 = arith.constant 0 : i32
    %c0_i32_0 = arith.constant 0 : i32
    %c0_i32_1 = arith.constant 0 : i32
    return %c0_i32, %c0_i32_0 : i32, i32
  }
  func.func @transform_8(%arg0: i32) -> (i32, i32) {
    %c0_i32 = arith.constant 0 : i32
    %c0_i32_0 = arith.constant 0 : i32
    %c0_i32_1 = arith.constant 0 : i32
    return %c0_i32, %c0_i32_0 : i32, i32
  }
  func.func @transform_9(%arg0: i32) -> (i32, i32) {
    %c0_i32 = arith.constant 0 : i32
    %c0_i32_0 = arith.constant 0 : i32
    %c0_i32_1 = arith.constant 0 : i32
    return %c0_i32, %c0_i32_0 : i32, i32
  }
  func.func @transform_10(%arg0: i32) -> (i32, i32) {
    %c0_i32 = arith.constant 0 : i32
    %c0_i32_0 = arith.constant 0 : i32
    %c0_i32_1 = arith.constant 0 : i32
    return %c0_i32, %c0_i32_0 : i32, i32
  }
  func.func @transform_11(%arg0: i32) -> (i32, i32, i32) {
    %c0_i32 = arith.constant 0 : i32
    %c0_i32_0 = arith.constant 0 : i32
    %c0_i32_1 = arith.constant 0 : i32
    return %arg0, %c0_i32, %c0_i32_0 : i32, i32, i32
  }
  func.func @transform_12(%arg0: i32) -> (i32, i32, i32) {
    %c0_i32 = arith.constant 0 : i32
    %c0_i32_0 = arith.constant 0 : i32
    %c0_i32_1 = arith.constant 0 : i32
    return %arg0, %c0_i32, %c0_i32_0 : i32, i32, i32
  }
  func.func @transform_13(%arg0: i32) -> (i32, i32, i32) {
    %c0_i32 = arith.constant 0 : i32
    %c0_i32_0 = arith.constant 0 : i32
    %c0_i32_1 = arith.constant 0 : i32
    return %arg0, %c0_i32, %c0_i32_0 : i32, i32, i32
  }
  func.func @transform_14(%arg0: i32) -> (i32, i32, i32) {
    %c0_i32 = arith.constant 0 : i32
    %c0_i32_0 = arith.constant 0 : i32
    %c0_i32_1 = arith.constant 0 : i32
    return %arg0, %c0_i32, %c0_i32_0 : i32, i32, i32
  }
  func.func @transform_15(%arg0: i32) -> (i32, i32, i32) {
    %c0_i32 = arith.constant 0 : i32
    %c0_i32_0 = arith.constant 0 : i32
    %c0_i32_1 = arith.constant 0 : i32
    return %arg0, %c0_i32, %c0_i32_0 : i32, i32, i32
  }
  func.func @transform_16(%arg0: i32) -> (i32, i32) {
    %c0_i32 = arith.constant 0 : i32
    %c0_i32_0 = arith.constant 0 : i32
    %c0_i32_1 = arith.constant 0 : i32
    return %c0_i32, %c0_i32_0 : i32, i32
  }
}

</mosaic_0001>

<bundles_post_ra>
// kernel: tpu_custom_call.1
= control target key start
LH: loop header
LB: loop body
LE: loop exit
PB: predicated region body
PF: predicated region fallthrough
CT: control target
= control target key end

     0   :  { %s3835_s0 = inlined_call_operand.vmem [shape: f32[16,8], index: 0, kind: input, shape index: {}]   ;;  %s3836_s1 = inlined_call_operand.vmem [shape: f32[32,8], index: 1, kind: input, shape index: {}]   ;;  %s3837_s2 = inlined_call_operand.vmem [shape: s32[32,2], index: 2, kind: input, shape index: {}]   ;;  %s3838_s3 = inlined_call_operand.vmem [shape: s32[2,32], index: 3, kind: input, shape index: {}]   ;;  %s3839_s4 = inlined_call_operand.vmem [shape: s32[1,16], index: 4, kind: input, shape index: {}]   ;;  %s3840_s5 = inlined_call_operand.hbm [shape: f32[8,32], index: 5, kind: input, shape index: {}]   ;;  %s3841_s6 = inlined_call_operand.vmem [shape: f32[1,32], index: 6, kind: input, shape index: {}]   ;;  %s3842_s7 = inlined_call_operand.hbm [shape: f32[8,16], index: 7, kind: input, shape index: {}]   ;;  %s3843_s8 = inlined_call_operand.vmem [shape: f32[1,16], index: 8, kind: input, shape index: {}]   ;;  %s3844_s9 = inlined_call_operand.hbm [shape: f32[32,128], index: 9, kind: input, shape index: {}]   ;;  %s3845_s10 = inlined_call_operand.hbm [shape: f32[1,128], index: 10, kind: input, shape index: {}]   ;;  %s3846_s11 = inlined_call_operand.vmem [shape: f32[3,80,128], index: 11, kind: input, shape index: {}]   ;;  %s3847_s12 = inlined_call_operand.vmem [shape: f32[3,128,128], index: 12, kind: input, shape index: {}]   ;;  %s3848_s13 = inlined_call_operand.vmem [shape: f32[3,96,64], index: 13, kind: input, shape index: {}]   ;;  %s3849_s14 = inlined_call_operand.vmem [shape: f32[3,64,32], index: 14, kind: input, shape index: {}]   ;;  %s3850_s15 = inlined_call_operand.hbm [shape: f32[3,4,128], index: 15, kind: input, shape index: {}]   ;;  %s3851_s16 = inlined_call_operand.hbm [shape: f32[4,64], index: 16, kind: output, shape index: {}]  }
   0x1   :  { %3857 = sst [smem:[#allocation23_spill]] %s3835_s0 }
   0x2   :  { %3858 = sst [smem:[#allocation24_spill]] %s3838_s3 }
   0x3   :  { %3859 = sst [smem:[#allocation25_spill]] %s3839_s4 }
   0x4   :  { %3860 = sst [smem:[#allocation26_spill]] %s3840_s5 }
   0x5   :  { %3861 = sst [smem:[#allocation27_spill]] %s3841_s6 }
   0x6   :  { %3862 = sst [smem:[#allocation28_spill]] %s3842_s7 }
   0x7   :  { %3863 = sst [smem:[#allocation29_spill]] %s3843_s8 }
   0x8   :  { %3864 = sst [smem:[#allocation30_spill]] %s3844_s9 }
   0x9   :  { %3865 = sst [smem:[#allocation31_spill]] %s3851_s16 }
   0xa   :  { %21 = vsyncpa [#allocation9], 0 }
   0xb   :  { %22 = vsyncpa [#allocation12], 0 }
   0xc   :  { %23 = vsyncpa [#allocation15], 0 }
   0xd   :  { %24 = vsyncpa [#allocation10], 0  ;;  %s3374_s21 = smov 0   ;;  %s3376_s22 = smov 0  }
   0xe   :  { %s3378_s23 = smov 0   ;;  %s3380_s24 = smov 0  }
   0xf LB: > { %s3273_s25 = smov [#allocation8]   ;;  %s3395_s27 = sadd.s32 4294967295, %s3271_s24   ;;  %s3271_s24 = sphi %s3380_s24, %s3894_s24   ;;  %s3267_s23 = sphi %s3378_s23, %s3893_s23   ;;  %s3263_s22 = sphi %s3376_s22, %s3892_s22   ;;  %s3259_s21 = sphi %s3374_s21, %s3891_s21  }
  0x10   : > { %s445_s26 = sshll.u32 %s3273_s25, 4  ;;  %p2406_p0 = scmp.ge.s32.totalorder %s3271_s24, 1  ;;  %s446_s26 = int_to_ptr.vmem [resolvable:$true] %s445_s26 }
  0x11   : > { %p3854_p1 = scmp.eq.s32.totalorder %s3395_s27, 0  ;;  %p417_p2 = scmp.lt.s32.totalorder %s3271_s24, 4 }
  0x12   : > { %s3274_s29 = smov [#allocation11]   ;;  %s3275_s0 = smov [#allocation13]  }
  0x13   : > { %p3401_p4 = pnand %p2406_p0, %p417_p2  ;;  %s459_s30 = sshll.u32 %s3274_s29, 4  ;;  %s3407_s30 = int_to_ptr.vmem [resolvable:$true] %s459_s30 }
  0x14   : > { %s472_s17 = sshll.u32 %s3275_s0, 4  ;;  %s3868_s5 = sld [smem:[#allocation26_spill]]  ;;  %s3415_s17 = int_to_ptr.vmem [resolvable:$true] %s472_s17 }
  0x15   : > { %s3866_s28 = scalar_select %p3401_p4, 1, 0 }
  0x16   : > { %p2951_p5 = pneg %p3401_p4 }
  0x18   : > { %p3411_p6 = pnand %p2951_p5, %p3854_p1 }
  0x1a   : > { %s3053_s25 = scalar_lea.hbm %s3868_s5, 128  ;;  %p3425_p8 = pneg %p3411_p6 }
  0x1b   : > { %p3054_p7 = scmp.ne.s32.totalorder %s3868_s5, %s3053_s25  ;;  %p3060_p11 = scmp.lt.u32.totalorder %s3053_s25, %s3868_s5 }
  0x1d   : > { %p3056_p9 = pnand %p3425_p8, %p3054_p7 }
  0x1f   : > { %p3057_p10 = pneg %p3056_p9 }
  0x21   : > { %p3062_p12 = pnand %p3060_p11, %p3057_p10 }
  0x23   : > { %3065 = shalt.err (!%p3062_p12)
}
  0x24   : > { %s3066_s19 = scalar_lea.vmem %s446_s26, 128  ;;  %p3074_p5 = scmp.lt.s32.totalorder %s446_s26, %s446_s26 }
  0x25   : > { %p3067_p13 = scmp.ne.s32.totalorder %s446_s26, %s3066_s19  ;;  %p3075_p3 = scmp.lt.s32.totalorder %s3066_s19, %s3066_s19 }
  0x27   : > { %p3069_p0 = pnand %p3067_p13, %p3425_p8  ;;  %p3076_p1 = por %p3075_p3, %p3074_p5 }
  0x29   : > { %p3070_p2 = pneg %p3069_p0 }
  0x2b   : > { %p3077_p4 = pnand %p3076_p1, %p3070_p2 }
  0x2d   : > { %3080 = shalt.err (!%p3077_p4)
}
  0x2e   : > { %2954 = dma.hbm_to_vmem [thread:$0]  (!%p3411_p6), %s3868_s5, 128, %s446_s26, [#allocation9]  }
  0x2f   : > { %s3870_s7 = sld [smem:[#allocation28_spill]] }
  0x35   : > { %s3081_s25 = scalar_lea.hbm %s3870_s7, 128 }
  0x36   : > { %p3082_p7 = scmp.ne.s32.totalorder %s3870_s7, %s3081_s25  ;;  %p3088_p1 = scmp.lt.u32.totalorder %s3081_s25, %s3870_s7 }
  0x38   : > { %p3084_p9 = pnand %p3082_p7, %p3425_p8 }
  0x3a   : > { %p3085_p3 = pneg %p3084_p9 }
  0x3c   : > { %p3090_p4 = pnand %p3088_p1, %p3085_p3 }
  0x3e   : > { %3093 = shalt.err (!%p3090_p4)
}
  0x3f   : > { %s3094_s26 = scalar_lea.vmem %s3407_s30, 128  ;;  %p3102_p13 = scmp.lt.s32.totalorder %s3407_s30, %s3407_s30 }
  0x40   : > { %p3095_p10 = scmp.ne.s32.totalorder %s3407_s30, %s3094_s26  ;;  %p3103_p0 = scmp.lt.s32.totalorder %s3094_s26, %s3094_s26 }
  0x42   : > { %p3097_p11 = pnand %p3095_p10, %p3425_p8  ;;  %p3104_p2 = por %p3103_p0, %p3102_p13 }
  0x44   : > { %p3098_p12 = pneg %p3097_p11 }
  0x46   : > { %p3105_p5 = pnand %p3104_p2, %p3098_p12 }
  0x48   : > { %3108 = shalt.err (!%p3105_p5)
}
  0x49   : > { %2957 = dma.hbm_to_vmem [thread:$0]  (!%p3411_p6), %s3870_s7, 128, %s3407_s30, [#allocation12]  }
  0x4a   : > { %s3871_s9 = sld [smem:[#allocation30_spill]] }
  0x50   : > { %s3109_s6 = scalar_lea.hbm %s3871_s9, 512 }
  0x51   : > { %p3110_p7 = scmp.ne.s32.totalorder %s3871_s9, %s3109_s6  ;;  %p3116_p1 = scmp.lt.u32.totalorder %s3109_s6, %s3871_s9 }
  0x53   : > { %p3112_p9 = pnand %p3110_p7, %p3425_p8 }
  0x55   : > { %p3113_p3 = pneg %p3112_p9 }
  0x57   : > { %p3118_p4 = pnand %p3116_p1, %p3113_p3 }
  0x59   : > { %3121 = shalt.err (!%p3118_p4)
}
  0x5a   : > { %s3122_s30 = scalar_lea.vmem %s3415_s17, 512  ;;  %p3130_p13 = scmp.lt.s32.totalorder %s3415_s17, %s3415_s17 }
  0x5b   : > { %p3123_p10 = scmp.ne.s32.totalorder %s3415_s17, %s3122_s30  ;;  %p3131_p0 = scmp.lt.s32.totalorder %s3122_s30, %s3122_s30 }
  0x5d   : > { %p3125_p11 = pnand %p3123_p10, %p3425_p8  ;;  %p3132_p2 = por %p3131_p0, %p3130_p13 }
  0x5f   : > { %p3126_p12 = pneg %p3125_p11 }
  0x61   : > { %p3133_p5 = pnand %p3132_p2, %p3126_p12 }
  0x63   : > { %3136 = shalt.err (!%p3133_p5)
}
  0x64   : > { %s3276_s26 = smov 128   ;;  %s3277_s3 = smov 8  }
  0x65   : > { %2960 = dma.hbm_to_vmem [thread:$0]  (!%p3411_p6), %s3871_s9, 512, %s3415_s17, [#allocation12], %s3276_s26, %s3276_s26, %s3277_s3  }
  0x66   : > { %s3278_s16 = smov [#allocation14]   ;;  %s3137_s0 = scalar_lea.hbm %s3845_s10, 16 }
  0x67   : > { %s486_s6 = sshll.u32 %s3278_s16, 4  ;;  %p3138_p7 = scmp.ne.s32.totalorder %s3845_s10, %s3137_s0  ;;  %s487_s6 = int_to_ptr.vmem [resolvable:$true] %s486_s6 }
  0x68   : > { %p3144_p1 = scmp.lt.u32.totalorder %s3137_s0, %s3845_s10 }
  0x69   : > { %p3140_p9 = pnand %p3138_p7, %p3425_p8 }
  0x6b   : > { %p3141_p3 = pneg %p3140_p9 }
  0x6d   : > { %p3146_p4 = pnand %p3144_p1, %p3141_p3 }
  0x6f   : > { %3149 = shalt.err (!%p3146_p4)
}
  0x70   : > { %s3150_s17 = scalar_lea.vmem %s487_s6, 16  ;;  %s3157_s26 = scalar_lea.vmem %s487_s6, 32 }
  0x71   : > { %p3151_p10 = scmp.ne.s32.totalorder %s487_s6, %s3150_s17  ;;  %p3158_p13 = scmp.lt.s32.totalorder %s487_s6, %s487_s6 }
  0x72   : > { %p3159_p0 = scmp.lt.s32.totalorder %s3157_s26, %s3150_s17 }
  0x73   : > { %p3153_p11 = pnand %p3151_p10, %p3425_p8 }
  0x74   : > { %p3160_p2 = por %p3159_p0, %p3158_p13 }
  0x75   : > { %p3154_p12 = pneg %p3153_p11 }
  0x77   : > { %p3161_p5 = pnand %p3160_p2, %p3154_p12 }
  0x79   : > { %3164 = shalt.err (!%p3161_p5)
}
  0x7a   : > { %2963 = dma.hbm_to_vmem [thread:$0]  (!%p3411_p6), %s3845_s10, 16, %s487_s6, [#allocation15]  }
  0x7b   : > { %s3506_s5 = sadd.s32 1, %s3271_s24   ;;  %s372_s7 = sadd.s32 1, %s3267_s23 }
  0x7c   : > { %s369_s18 = ssub.s32 %s3271_s24, %s3506_s5  ;;  %p379_p8 = scmp.ne.s32.totalorder %s3267_s23, %s3263_s22 }
  0x7d   : > { %p370_p7 = scmp.eq.s32.totalorder %s369_s18, 0  ;;  %p380_p9 = scmp.eq.s32.totalorder %s3271_s24, 0 }
  0x7e   : > { %p385_p3 = scmp.ne.s32.totalorder %s3263_s22, %s3259_s21  ;;  %p2972_p1 = scmp.lt.s32.totalorder %s3271_s24, 3 }
  0x7f   : > { %s3518_s29 = scalar_select %p370_p7, %s3267_s23, %s372_s7  }
  0x80   : > { %p381_p4 = por %p380_p9, %p379_p8  ;;  %p3872_p10 = scmp.eq.s32.totalorder %s3395_s27, 0 }
  0x81   : > { %s529_s16 = sand.u32 1, %s3271_s24   ;;  %s531_s6 = sand.u32 1, %s3267_s23  }
  0x82   : > { %p3522_p11 = por %p3872_p10, %p385_p3  ;;  %s2412_s20 = sshll.u32 %s531_s6, 2 }
  0x83   : > { %s2413_s25 = sshll.u32 %s3271_s24, 6  ;;  %s533_s21 = scalar_lea.vmem [#allocation16], %s2412_s20 }
  0x84   : > { %s3532_s30 = scalar_lea.hbm %s3850_s15, %s2413_s25  ;;  %s540_s17 = sshll.u32 %s533_s21, 4  ;;  %s3534_s17 = int_to_ptr.vmem [resolvable:$true] %s540_s17 }
  0x85   : > { %p3536_p6 = pnand %p2972_p1, %p381_p4  ;;  %s530_s24 = scalar_lea.sflag [#allocation9], %s529_s16 }
  0x86   : > { %s3165_s3 = scalar_lea.hbm %s3532_s30, 64  ;;  %s3170_s18 = scalar_lea.hbm %s3850_s15, 192 }
  0x87   : > { %p3166_p12 = scmp.ne.s32.totalorder %s3532_s30, %s3165_s3  ;;  %p3167_p13 = pneg %p3536_p6 }
  0x88   : > { %p3171_p5 = scmp.lt.u32.totalorder %s3532_s30, %s3850_s15  ;;  %p3172_p8 = scmp.lt.u32.totalorder %s3170_s18, %s3165_s3 }
  0x89   : > { %p3168_p0 = pnand %p3167_p13, %p3166_p12  ;;  %p3174_p9 = scmp.lt.u32.totalorder %s3165_s3, %s3532_s30 }
  0x8a   : > { %p3173_p7 = por %p3172_p8, %p3171_p5 }
  0x8b   : > { %p3169_p2 = pneg %p3168_p0 }
  0x8c   : > { %p3175_p3 = por %p3174_p9, %p3173_p7 }
  0x8e   : > { %p3176_p1 = pnand %p3175_p3, %p3169_p2 }
  0x90   : > { %3179 = shalt.err (!%p3176_p1)
}
  0x91   : > { %s3180_s16 = scalar_lea.vmem %s3534_s17, 64  ;;  %s3279_s25 = smov [#allocation16]  }
  0x92   : > { %p3181_p4 = scmp.ne.s32.totalorder %s3534_s17, %s3180_s16  ;;  %s3185_s0 = sshll.u32 %s3279_s25, 4  ;;  %s3186_s0 = int_to_ptr.vmem [resolvable:$false] %s3185_s0 }
  0x93   : > { %s3187_s19 = scalar_lea.vmem %s3186_s0, 128  ;;  %p3188_p0 = scmp.lt.s32.totalorder %s3534_s17, %s3186_s0 }
  0x94   : > { %p3183_p10 = pnand %p3181_p4, %p3167_p13  ;;  %p3189_p5 = scmp.lt.s32.totalorder %s3187_s19, %s3180_s16 }
  0x96   : > { %p3184_p12 = pneg %p3183_p10  ;;  %p3190_p8 = por %p3189_p5, %p3188_p0 }
  0x98   : > { %p3191_p7 = pnand %p3190_p8, %p3184_p12 }
  0x9a   : > { %3194 = shalt.err (!%p3191_p7)
}
  0x9b   : > { %2967 = dma.hbm_to_vmem [thread:$0]  (!%p3536_p6), %s3532_s30, 64, %s3534_s17, %s530_s24  }
  0x9c   : > { %p3875_p2 = scmp.ne.s32.totalorder %s3866_s28, 0 }
  0x9d   : > { %p3876_p13 = scmp.eq.s32.totalorder (!%p3875_p2), %s3395_s27, 0 }
  0x9e   : > { %549 = sbr.rel (%p3875_p2) target bundleno = 2610 (0xa32), region = 84 }
  0xa5   : > { %3238 = dma.done.wait (%p3876_p13), [#allocation9], 128   ;;  %p3877_p9 = pmov %p3876_p13 }
  0xa7   : > { %3240 = vsyncadd (%p3877_p9), [#allocation9], 4294967168  ;;  %p3878_p3 = pmov %p3877_p9 }
  0xa9   : > { %3242 = dma.done.wait (%p3878_p3), [#allocation12], 640   ;;  %p3879_p1 = pmov %p3878_p3 }
  0xab   : > { %3244 = vsyncadd (%p3879_p1), [#allocation12], 4294966656  ;;  %p3880_p4 = pmov %p3879_p1 }
  0xac   : > { %p3881_p6 = pmov %p3879_p1 }
  0xad   : > { %3246 = dma.done.wait (%p3880_p4), [#allocation15], 16  }
  0xae   : > { %3248 = vsyncadd (%p3881_p6), [#allocation15], 4294967280  ;;  %s567_s28 = sand.u32 1, %s3395_s27   ;;  %s569_s30 = sand.u32 1, %s3263_s22  }
  0xaf   : > { %s3581_s21 = sshll.u32 %s569_s30, 2  ;;  %s568_s17 = scalar_lea.sflag [#allocation9], %s567_s28 }
  0xb0   : > { %3250 = dma.done.wait (%p3522_p11), %s568_s17, 64  }
  0xb1   : > { %3252 = vsyncadd (%p3522_p11), %s568_s17, 4294967232  ;;  %p635_p10 = scmp.lt.s32.totalorder %s3395_s27, 2  ;;  %p3882_p11 = scmp.ne.s32.totalorder %s3395_s27, 0 }
  0xb2   : > { %v758_v0 = vld [vmem:[#allocation11] sm:$0xff] (!%p3882_p11)  ;;  %vm669_vm0 = vcmask (!%p3882_p11), 64512   ;;  %v754_v1 = vld [vmem:[%s3836_s1] sm:$0xff] (!%p3882_p11)  ;;  %v755_v2 = vld [vmem:[%s3836_s1 + $0x8] sm:$0xff] (!%p3882_p11)  ;;  %vm947_vm1 = vcmask (!%p3882_p11), 519168   ;;  %v3280_v7 = vmov (!%p3882_p11), 0.0   ;;  %v872_v15 = vlaneseq (!%p3882_p11) }
  0xb3   : > { %s636_s24 = scalar_select %p635_p10, %s3395_s27, 2 }
  0xb4   : > { %658 = sbr.rel (%p3882_p11) target bundleno = 409 (0x199), region = 108  ;;  %2595 = vmatprep.subr.mxu1 (!%p3882_p11), %v758_v0  ;;  %2597 = vmatprep.mubr.msk.f32.mxu1 (!%p3882_p11), %vm669_vm0, %v754_v1  ;;  %v661_v3 = vld [vmem:[#allocation8] sm:$0xff] (!%p3882_p11)  ;;  %948 = vst.msk [vmem:[#allocation17] sm:$0xf] (!%p3882_p11), %vm947_vm1, %v3280_v7  ;;  %v757_v9 = vld [vmem:[%s3836_s1 + $0x18] sm:$0xff] (!%p3882_p11)  ;;  %v868_v10 = vld [vmem:[%s3837_s2] sm:$0xff] (!%p3882_p11) }
  0xb5   : > { %s2927_s3 = smul.u32 80, %s636_s24  ;;  %s2479_s8 = sshll.u32 %s636_s24, 7  ;;  %2596 = vmatpush3.msra.mxu1 (!%p3882_p11), %v758_v0  ;;  %2590 = vmatprep.subr.mxu0 (!%p3882_p11), %v661_v3  ;;  %v756_v6 = vld [vmem:[%s3836_s1 + $0x10] sm:$0xff] (!%p3882_p11)  ;;  %v3281_v11 = vmov (!%p3882_p11), 0   ;;  %v871_v12 = vld [vmem:[%s3837_s2 + $0x18] sm:$0xff] (!%p3882_p11)  ;;  %v869_v13 = vld [vmem:[%s3837_s2 + $0x8] sm:$0xff] (!%p3882_p11) }
  0xb6   : > { %s3593_s6 = scalar_lea.vmem %s3847_s12, %s2479_s8  ;;  %s2928_s20 = smul.u32 96, %s636_s24  ;;  %2598 = vmatmul.mubr.msk.f32.vlgmr.msra.gmra.mrb[0].mxu1 (!%p3882_p11), %vm669_vm0, %v755_v2  ;;  %2591 = vmatpush3.msra.mxu0 (!%p3882_p11), %v661_v3  ;;  %v870_v8 = vld [vmem:[%s3837_s2 + $0x10] sm:$0xff] (!%p3882_p11)  ;;  %v3282_v14 = vmov (!%p3882_p11), 1   ;;  %v925_v16 = vshrl.u32 (!%p3882_p11), %v872_v15, 7  ;;  %vm751_vm2 = vcmask (!%p3882_p11), 261120   ;;  %v873_v26 = vand.u32 (!%p3882_p11), 127, %v872_v15 }
  0xb7   : > { %s3598_s0 = scalar_lea.vmem %s3846_s11, %s2927_s3  ;;  %s2480_s19 = sshll.u32 %s636_s24, 6  ;;  %2600 = vmatprep.mubr.msk.f32.mxu1 (!%p3882_p11), %vm669_vm0, %v756_v6  ;;  %3027 = vset.pattern.permute.xlu1 (!%p3882_p11), %v3281_v11  ;;  %vm863_vm10 = vcmask (!%p3882_p11), 130048  }
  0xb8   : > { %s3603_s30 = scalar_lea.vmem %s3848_s13, %s2928_s20  ;;  %s3608_s9 = scalar_lea.vmem %s3849_s14, %s2480_s19  ;;  %3026 = vset.pattern.permute.xlu0 (!%p3882_p11), %v3281_v11  ;;  %881 = vperm.xlu1 (!%p3882_p11), %3027, %v870_v8   ;;  %v926_v17 = vadd.s32 (!%p3882_p11), 8, %v925_v16 }
  0xb9   : > { %s3883_s20 = sld [smem:[#allocation23_spill]] (!%p3882_p11)  ;;  %875 = vperm.xlu0 (!%p3882_p11), %3026, %v868_v10   ;;  %s3884_s28 = sld [smem:[#allocation24_spill]] (!%p3882_p11) }
  0xba   : > { %2601 = vmatmul.mubr.msk.f32.gmra.mrb[2].mxu1 (!%p3882_p11), %vm669_vm0, %v757_v9  ;;  %s3885_s3 = sld [smem:[#allocation29_spill]] (!%p3882_p11)  ;;  %s3886_s16 = sld [smem:[#allocation27_spill]] (!%p3882_p11) }
  0xbc   : > { %884 = vperm.xlu1 %3027, %v871_v12  }
  0xbd   : > { %878 = vperm.xlu0 %3026, %v869_v13  }
  0xbf   : > { %v659_v4 = vld [vmem:[%s3883_s20] sm:$0xff]  ;;  %v660_v5 = vld [vmem:[%s3883_s20 + $0x8] sm:$0xff] }
  0xc0   : > { %2592 = vmatprep.mubr.msk.f32.mxu0 %vm669_vm0, %v659_v4  ;;  %3029 = vset.pattern.permute.xlu1 %v3282_v14  ;;  %v2436_v18 = vld [vmem:[%s3884_s28] ss:$0 sm:$0xff]  ;;  %v2435_v19 = vld [vmem:[%s3884_s28 + $0x1] ss:$0 sm:$0xff] }
  0xc1   : > { %2593 = vmatmul.mubr.msk.f32.vlgmr.msra.gmra.mrb[0].mxu0 %vm669_vm0, %v660_v5  ;;  %3028 = vset.pattern.permute.xlu0 %v3282_v14  ;;  %vm931_vm3 = vcmp.eq.s32.totalorder %v925_v16, %v2435_v19  ;;  %vm932_vm4 = vcmp.eq.s32.totalorder %v926_v17, %v2435_v19  ;;  %vm941_vm5 = vcmp.eq.s32.totalorder %v925_v16, %v2436_v18  ;;  %v2430_v47 = vld [vmem:[%s3885_s3] ss:$0 sm:$0xff] }
  0xc2   : > { %902 = vperm.xlu1 %3029, %v869_v13   ;;  %899 = vperm.xlu0 %3028, %v868_v10   ;;  %v933_v20 = vsel %vm931_vm3, 1.0, %v3280_v7  ;;  %v934_v21 = vsel %vm932_vm4, 1.0, %v3280_v7  ;;  %vm942_vm6 = vcmp.eq.s32.totalorder %v926_v17, %v2436_v18  ;;  %v943_v22 = vsel %vm941_vm5, 1.0, %v3280_v7  ;;  %v2427_v49 = vld [vmem:[%s3886_s16] ss:$0 sm:$0xff] }
  0xc3   : > { %v935_v23 = vpack.c.bf16 %v934_v21, %v933_v20  ;;  %v944_v24 = vsel %vm942_vm6, 1.0, %v3280_v7 }
  0xc4   : > { %v945_v25 = vpack.c.bf16 %v944_v24, %v943_v22 }
  0xc5   : > { %936 = vst.msk [vmem:[#allocation6] sm:$0xff] %vm751_vm2, %v935_v23 }
  0xc6   : > { %905 = vperm.xlu1 %3029, %v870_v8   ;;  %908 = vperm.xlu0 %3028, %v871_v12   ;;  %946 = vst.msk [vmem:[#allocation7] sm:$0xff] %vm751_vm2, %v945_v25 }
 0x137   : > { %v882_v27 = vpop.permute.xlu1 %881 }
 0x138   : > { %vm888_vm7 = vcmp.eq.s32.totalorder %v873_v26, %v882_v27  ;;  %v876_v28 = vpop.permute.xlu0 %875 }
 0x139   : > { %vm886_vm8 = vcmp.eq.s32.totalorder %v873_v26, %v876_v28  ;;  %v892_v29 = vsel %vm888_vm7, 1.0, %v3280_v7 }
 0x13a   : > { %v890_v31 = vsel %vm886_vm8, 1.0, %v3280_v7 }
 0x13b   : > { %v885_v30 = vpop.permute.xlu1 %884 }
 0x13c   : > { %vm889_vm9 = vcmp.eq.s32.totalorder %v873_v26, %v885_v30  ;;  %v879_v32 = vpop.permute.xlu0 %878 }
 0x13d   : > { %v893_v33 = vsel %vm889_vm9, 1.0, %v3280_v7  ;;  %vm887_vm11 = vcmp.eq.s32.totalorder %v873_v26, %v879_v32 }
 0x13e   : > { %v895_v34 = vpack.c.bf16 %v893_v33, %v892_v29  ;;  %v891_v35 = vsel %vm887_vm11, 1.0, %v3280_v7 }
 0x13f   : > { %v894_v36 = vpack.c.bf16 %v891_v35, %v890_v31 }
 0x140   : > { %897 = vst.msk [vmem:[#allocation4 + $0x8] sm:$0xff] %vm863_vm10, %v895_v34 }
 0x141   : > { %v903_v37 = vpop.permute.xlu1 %902  ;;  %896 = vst.msk [vmem:[#allocation4] sm:$0xff] %vm863_vm10, %v894_v36  ;;  %v900_v38 = vpop.permute.xlu0 %899 }
 0x142   : > { %vm911_vm12 = vcmp.eq.s32.totalorder %v873_v26, %v903_v37  ;;  %vm910_vm13 = vcmp.eq.s32.totalorder %v873_v26, %v900_v38 }
 0x143   : > { %v915_v39 = vsel %vm911_vm12, 1.0, %v3280_v7  ;;  %v914_v40 = vsel %vm910_vm13, 1.0, %v3280_v7 }
 0x144   : > { %v918_v41 = vpack.c.bf16 %v915_v39, %v914_v40 }
 0x145   : > { %v906_v42 = vpop.permute.xlu1 %905  ;;  %v909_v43 = vpop.permute.xlu0 %908 }
 0x146   : > { %vm912_vm14 = vcmp.eq.s32.totalorder %v873_v26, %v906_v42  ;;  %920 = vst.msk [vmem:[#allocation5] sm:$0xff] %vm863_vm10, %v918_v41  ;;  %vm913_vm15 = vcmp.eq.s32.totalorder %v873_v26, %v909_v43 }
 0x147   : > { %v916_v44 = vsel %vm912_vm14, 1.0, %v3280_v7  ;;  %v917_v45 = vsel %vm913_vm15, 1.0, %v3280_v7 }
 0x148   : > { %v919_v46 = vpack.c.bf16 %v917_v45, %v916_v44 }
 0x14a   : > { %921 = vst.msk [vmem:[#allocation5 + $0x8] sm:$0xff] %vm863_vm10, %v919_v46 }
 0x189   : > { %v2599_v48 = vpop.f32.mrb[0].mxu1 }
 0x18a   : > { %v850_v50 = vadd.f32 %v2599_v48, %v2430_v47  ;;  %v844_v51 = vpop.f32.mrb[1].mxu1 }
 0x18b   : > { %v845_v52 = vadd.f32 %v2430_v47, %v844_v51 }
 0x18c   : > { %865 = vst.msk [vmem:[#allocation3 + $0x8] sm:$0xff] %vm863_vm10, %v850_v50 }
 0x18d   : > { %864 = vst.msk [vmem:[#allocation3] sm:$0xff] %vm863_vm10, %v845_v52  ;;  %v2602_v57 = vpop.f32.mrb[2].mxu1 }
 0x18e   : > { %v860_v58 = vadd.f32 %v2602_v57, %v2430_v47  ;;  %v854_v59 = vpop.f32.mrb[3].mxu1 }
 0x18f   : > { %v855_v60 = vadd.f32 %v2430_v47, %v854_v59 }
 0x190   : > { %867 = vst.msk [vmem:[#allocation3 + $0x18] sm:$0xff] %vm863_vm10, %v860_v58 }
 0x191   : > { %866 = vst.msk [vmem:[#allocation3 + $0x10] sm:$0xff] %vm863_vm10, %v855_v60 }
 0x194   : > { %v2594_v53 = vpop.f32.mrb[0].mxu0 }
 0x195   : > { %v748_v54 = vadd.f32 %v2594_v53, %v2427_v49  ;;  %v742_v55 = vpop.f32.mrb[1].mxu0 }
 0x196   : > { %v743_v56 = vadd.f32 %v2427_v49, %v742_v55 }
 0x197   : > { %753 = vst.msk [vmem:[#allocation2 + $0x8] sm:$0xff] %vm751_vm2, %v748_v54 }
 0x198   : > { %752 = vst.msk [vmem:[#allocation2] sm:$0xff] %vm751_vm2, %v743_v56 }
 0x199 PF: > { %vm984_vm0 = vcmask 130048   ;;  %v1082_v63 = vld [vmem:[#allocation5] sm:$0xff]  ;;  %v1083_v2 = vld [vmem:[#allocation5 + $0x8] sm:$0xff]  ;;  %v978_v3 = vld [vmem:[#allocation4] sm:$0xff]  ;;  %vm1185_vm1 = vcmask 261120   ;;  %vm1863_vm2 = vcmask 523264  }
 0x19a   : > { %v1084_v1 = vunpack.c.l.bf16 %v1082_v63  ;;  %v980_v4 = vunpack.c.l.bf16 %v978_v3  ;;  %v979_v5 = vld [vmem:[#allocation4 + $0x8] sm:$0xff]  ;;  %v959_v6 = vld [vmem:[%s3598_s0 + $0x20] sm:$0xff]  ;;  %v1085_v8 = vunpack.c.h.bf16 %v1082_v63  ;;  %v961_v10 = vld [vmem:[%s3598_s0 + $0x30] sm:$0xff]  ;;  %v1086_v12 = vunpack.c.l.bf16 %v1083_v2  ;;  %p2467_p12 = scmp.ne.s32.totalorder %s3395_s27, 2 }
 0x19b   : > { %v960_v7 = vld [vmem:[%s3598_s0 + $0x28] sm:$0xff]  ;;  %v962_v11 = vld [vmem:[%s3598_s0 + $0x38] sm:$0xff]  ;;  %v981_v13 = vunpack.c.h.bf16 %v978_v3  ;;  %v982_v14 = vunpack.c.l.bf16 %v979_v5  ;;  %v1087_v16 = vunpack.c.h.bf16 %v1083_v2  ;;  %v983_v17 = vunpack.c.h.bf16 %v979_v5  ;;  %v955_v18 = vld [vmem:[%s3598_s0] sm:$0xff]  ;;  %s3888_s25 = sld [smem:[#allocation25_spill]] (!%p2467_p12) }
 0x19c   : > { %2617 = vmatprep.mubr.msk.f32.mxu1 %vm984_vm0, %v1084_v1  ;;  %v2796_v9 = vpack.c.bf16 %v960_v7, %v959_v6  ;;  %2607 = vmatprep.mubr.msk.f32.mxu0 %vm984_vm0, %v980_v4  ;;  %v2800_v15 = vpack.c.bf16 %v962_v11, %v961_v10  ;;  %v956_v19 = vld [vmem:[%s3598_s0 + $0x8] sm:$0xff]  ;;  %v1493_v21 = vld [vmem:[%s3593_s6] sm:$0xff]  ;;  %v1495_v23 = vld [vmem:[%s3593_s6 + $0x10] sm:$0xff]  ;;  %v1481_v1 = vlaneseq  ;;  %vm3286_vm3 = vmmov (!%p2467_p12), 0  }
 0x19d   : > { %v2804_v20 = vpack.c.bf16 %v956_v19, %v955_v18  ;;  %v1494_v22 = vld [vmem:[%s3593_s6 + $0x8] sm:$0xff]  ;;  %v1496_v25 = vld [vmem:[%s3593_s6 + $0x18] sm:$0xff]  ;;  %v1497_v27 = vld [vmem:[%s3593_s6 + $0x20] sm:$0xff]  ;;  %vm2260_vm5 = vcmask (!%p2467_p12), 519168  }
 0x19e   : > { %v3687_v62 = vld [vmem:[#allocation2 + $0x8] sm:$0xff]  ;;  %v2816_v24 = vpack.c.bf16 %v1494_v22, %v1493_v21  ;;  %v2820_v26 = vpack.c.bf16 %v1496_v25, %v1495_v23  ;;  %v1498_v28 = vld [vmem:[%s3593_s6 + $0x28] sm:$0xff]  ;;  %v1499_v30 = vld [vmem:[%s3593_s6 + $0x30] sm:$0xff]  ;;  %v3737_v2 = vshrl.u32 %v1481_v1, 7 }
 0x19f   : > { %v3685_v61 = vld [vmem:[#allocation2] sm:$0xff]  ;;  %v2824_v29 = vpack.c.bf16 %v1498_v28, %v1497_v27  ;;  %v1500_v31 = vld [vmem:[%s3593_s6 + $0x38] sm:$0xff]  ;;  %v1501_v33 = vld [vmem:[%s3593_s6 + $0x40] sm:$0xff] }
 0x1a0   : > { %v2788_v0 = vpack.c.bf16 %v3687_v62, %v3685_v61  ;;  %v2828_v32 = vpack.c.bf16 %v1500_v31, %v1499_v30  ;;  %v1502_v34 = vld [vmem:[%s3593_s6 + $0x48] sm:$0xff]  ;;  %v1503_v36 = vld [vmem:[%s3593_s6 + $0x50] sm:$0xff]  ;;  %v1504_v37 = vld [vmem:[%s3593_s6 + $0x58] sm:$0xff]  ;;  %v1483_v3 = vsub.s32 0, %v3737_v2  ;;  %v1511_v18 = vsub.s32 1, %v3737_v2 }
 0x1a1   : > { %v2832_v35 = vpack.c.bf16 %v1502_v34, %v1501_v33  ;;  %v2836_v38 = vpack.c.bf16 %v1504_v37, %v1503_v36  ;;  %v1505_v39 = vld [vmem:[%s3593_s6 + $0x60] sm:$0xff]  ;;  %v1506_v40 = vld [vmem:[%s3593_s6 + $0x68] sm:$0xff]  ;;  %v957_v42 = vld [vmem:[%s3598_s0 + $0x10] sm:$0xff] }
 0x1a2   : > { %2793 = vmatprep.subr.bf16.mxu1 %v2788_v0  ;;  %2789 = vmatprep.subr.bf16.mxu0 %v2788_v0  ;;  %v2840_v41 = vpack.c.bf16 %v1506_v40, %v1505_v39  ;;  %v958_v43 = vld [vmem:[%s3598_s0 + $0x18] sm:$0xff]  ;;  %v963_v49 = vld [vmem:[%s3598_s0 + $0x40] sm:$0xff]  ;;  %v964_v50 = vld [vmem:[%s3598_s0 + $0x48] sm:$0xff]  ;;  %s3887_s0 = scalar_lea.vmem [#allocation16], %s3581_s21  ;;  %s3283_s21 = smov 64  }
 0x1a3   : > { %2795 = vmatpush3.bf16.msra.mxu1 %v2788_v0  ;;  %2791 = vmatpush3.bf16.msra.mxu0 %v2788_v0  ;;  %v2808_v47 = vpack.c.bf16 %v958_v43, %v957_v42  ;;  %v2812_v54 = vpack.c.bf16 %v964_v50, %v963_v49  ;;  %v951_v56 = vld [vmem:[#allocation3] sm:$0xff]  ;;  %v952_v57 = vld [vmem:[#allocation3 + $0x8] sm:$0xff]  ;;  %v953_v58 = vld [vmem:[#allocation3 + $0x10] sm:$0xff] }
 0x1a4   : > { %2797 = vmatprep.subr.bf16.mxu0 %v2796_v9  ;;  %2817 = vmatprep.subr.bf16.mxu1 %v2816_v24  ;;  %v954_v59 = vld [vmem:[#allocation3 + $0x18] sm:$0xff]  ;;  %v1507_v60 = vld [vmem:[%s3593_s6 + $0x70] sm:$0xff]  ;;  %v3742_v4 = vld [vmem:[%s3887_s0] sm:$0xf] }
 0x1a5   : > { %v1508_v63 = vld [vmem:[%s3593_s6 + $0x78] sm:$0xff]  ;;  %v1484_v5 = vrot.slane %v3742_v4, %v1483_v3  ;;  %v1512_v19 = vrot.slane %v3742_v4, %v1511_v18  ;;  %v3749_v23 = vld [vmem:[#allocation7] sm:$0xff]  ;;  %v973_v34 = vld [vmem:[%s3603_s30 + $0x40] sm:$0xff]  ;;  %v1947_v18 = vsub.s32 2, %v3737_v2 }
 0x1a6   : > { %2618 = vmatmul.mubr.msk.f32.vlgmr.msra.gmra.mrb[0].mxu1 %vm984_vm0, %v1085_v8  ;;  %2608 = vmatmul.mubr.msk.f32.vlgmr.msra.gmra.mrb[0].mxu0 %vm984_vm0, %v981_v13  ;;  %v2844_v0 = vpack.c.bf16 %v1508_v63, %v1507_v60  ;;  %v1602_v25 = vunpack.c.l.bf16 %v3749_v23  ;;  %v975_v36 = vld [vmem:[%s3603_s30 + $0x50] sm:$0xff]  ;;  %v965_v40 = vld [vmem:[%s3603_s30] sm:$0xff]  ;;  %v972_v50 = vld [vmem:[%s3603_s30 + $0x38] sm:$0xff]  ;;  %v1603_v63 = vunpack.c.h.bf16 %v3749_v23 }
 0x1a7   : > { %2620 = vmatprep.mubr.msk.f32.mxu1 %vm984_vm0, %v1086_v12  ;;  %2610 = vmatprep.mubr.msk.f32.mxu0 %vm984_vm0, %v982_v14  ;;  %v967_v43 = vld [vmem:[%s3603_s30 + $0x10] sm:$0xff]  ;;  %v1598_v60 = vld [vmem:[#allocation6] sm:$0xff] }
 0x1a8   : > { %2799 = vmatpush3.bf16.msra.mxu0 %v2796_v9  ;;  %2819 = vmatpush3.bf16.msra.mxu1 %v2816_v24  ;;  %v971_v49 = vld [vmem:[%s3603_s30 + $0x30] sm:$0xff]  ;;  %v1600_v1 = vunpack.c.h.bf16 %v1598_v60  ;;  %v1953_v3 = vld [vmem:[%s3608_s9] sm:$0xff] }
 0x1a9   : > { %2801 = vmatprep.subr.bf16.mxu0 %v2800_v15  ;;  %2821 = vmatprep.subr.bf16.mxu1 %v2820_v26 }
 0x1aa   : > { %2621 = vmatmul.mubr.msk.f32.gmra.mrb[2].mxu1 %vm984_vm0, %v1087_v16  ;;  %2611 = vmatmul.mubr.msk.f32.gmra.mrb[2].mxu0 %vm984_vm0, %v983_v17 }
 0x1ac   : > { %2803 = vmatpush3.bf16.msra.mxu0 %v2800_v15  ;;  %2823 = vmatpush3.bf16.msra.mxu1 %v2820_v26 }
 0x1ad   : > { %2805 = vmatprep.subr.bf16.mxu0 %v2804_v20  ;;  %2825 = vmatprep.subr.bf16.mxu1 %v2824_v29 }
 0x1b0   : > { %2827 = vmatpush3.bf16.msra.mxu1 %v2824_v29 }
 0x1b1   : > { %2829 = vmatprep.subr.bf16.mxu1 %v2828_v32 }
 0x1b4   : > { %2831 = vmatpush3.bf16.msra.mxu1 %v2828_v32 }
 0x1b5   : > { %2833 = vmatprep.subr.bf16.mxu1 %v2832_v35 }
 0x1b8   : > { %2835 = vmatpush3.bf16.msra.mxu1 %v2832_v35  ;;  %v974_v35 = vld [vmem:[%s3603_s30 + $0x48] sm:$0xff] }
 0x1b9   : > { %2837 = vmatprep.subr.bf16.mxu1 %v2836_v38  ;;  %v2864_v37 = vpack.c.bf16 %v974_v35, %v973_v34  ;;  %v2056_v34 = vld [vmem:[#allocation13] sm:$0xff] (!%p2467_p12)  ;;  %v2057_v35 = vld [vmem:[#allocation13 + $0x8] sm:$0xff] (!%p2467_p12) }
 0x1bc   : > { %2839 = vmatpush3.bf16.msra.mxu1 %v2836_v38  ;;  %v976_v38 = vld [vmem:[%s3603_s30 + $0x58] sm:$0xff] }
 0x1bd   : > { %2841 = vmatprep.subr.bf16.mxu1 %v2840_v41  ;;  %v2868_v39 = vpack.c.bf16 %v976_v38, %v975_v36  ;;  %v2058_v36 = vld [vmem:[#allocation13 + $0x10] sm:$0xff] (!%p2467_p12) }
 0x1c0   : > { %2843 = vmatpush3.bf16.msra.mxu1 %v2840_v41  ;;  %v966_v41 = vld [vmem:[%s3603_s30 + $0x8] sm:$0xff] }
 0x1c1   : > { %2845 = vmatprep.subr.bf16.mxu1 %v2844_v0  ;;  %v2872_v42 = vpack.c.bf16 %v966_v41, %v965_v40 }
 0x1c4   : > { %2847 = vmatpush3.bf16.msra.mxu1 %v2844_v0  ;;  %v1599_v0 = vunpack.c.l.bf16 %v1598_v60 }
 0x1c5   : > { %2865 = vmatprep.subr.bf16.mxu1 %v2864_v37 }
 0x279   : > { %v2619_v44 = vpop.f32.mrb[0].mxu1  ;;  %v2609_v46 = vpop.f32.mrb[0].mxu0 }
 0x27a   : > { %v1166_v45 = vpop.f32.mrb[1].mxu1  ;;  %v1063_v48 = vpop.f32.mrb[1].mxu0 }
 0x27b   : > { %2631 = vmatprep.mubr.msk.f32.mxu0 %vm1185_vm1, %v1166_v45 }
 0x27c   : > { %2632 = vmatmul.mubr.msk.f32.vlgmr.msra.gmra.mrb[4].mxu0 %vm1185_vm1, %v2619_v44  ;;  %v968_v44 = vld [vmem:[%s3603_s30 + $0x18] sm:$0xff] }
 0x27d   : > { %v2622_v51 = vpop.f32.mrb[2].mxu1  ;;  %2807 = vmatpush3.bf16.msra.mxu0 %v2804_v20  ;;  %v2612_v53 = vpop.f32.mrb[2].mxu0  ;;  %v2876_v45 = vpack.c.bf16 %v968_v44, %v967_v43 }
 0x27e   : > { %v1176_v52 = vpop.f32.mrb[3].mxu1  ;;  %2809 = vmatprep.subr.bf16.mxu0 %v2808_v47  ;;  %v1073_v55 = vpop.f32.mrb[3].mxu0 }
 0x27f   : > { %2634 = vmatprep.mubr.msk.f32.mxu0 %vm1185_vm1, %v1176_v52 }
 0x280   : > { %2635 = vmatmul.mubr.msk.f32.gmra.mrb[6].mxu0 %vm1185_vm1, %v2622_v51  ;;  %v2884_v51 = vpack.c.bf16 %v972_v50, %v971_v49 }
 0x281   : > { %2811 = vmatpush3.bf16.msra.mxu0 %v2808_v47  ;;  %2645 = vmatprep.mubr.msk.f32.mxu0 %vm1185_vm1, %v1063_v48  ;;  %v970_v47 = vld [vmem:[%s3603_s30 + $0x28] sm:$0xff] }
 0x282   : > { %2813 = vmatprep.subr.bf16.mxu0 %v2812_v54 }
 0x284   : > { %2646 = vmatmul.mubr.msk.f32.vlgmr.msra.gmra.mrb[4].mxu0 %vm1185_vm1, %v2609_v46  ;;  %v969_v46 = vld [vmem:[%s3603_s30 + $0x20] sm:$0xff] }
 0x285   : > { %2815 = vmatpush3.bf16.msra.mxu0 %v2812_v54  ;;  %2648 = vmatprep.mubr.msk.f32.mxu0 %vm1185_vm1, %v1073_v55  ;;  %v2880_v48 = vpack.c.bf16 %v970_v47, %v969_v46 }
 0x288   : > { %2649 = vmatmul.mubr.msk.f32.gmra.mrb[6].mxu0 %vm1185_vm1, %v2612_v53 }
 0x289   : > { %2655 = vmatprep.mubr.msk.f32.mxu0 %vm984_vm0, %v951_v56 }
 0x28c   : > { %2656 = vmatmul.mubr.msk.f32.vlgmr.msra.gmra.mrb[4].mxu0 %vm984_vm0, %v952_v57 }
 0x28d   : > { %2658 = vmatprep.mubr.msk.f32.mxu0 %vm984_vm0, %v953_v58 }
 0x290   : > { %2659 = vmatmul.mubr.msk.f32.gmra.mrb[6].mxu0 %vm984_vm0, %v954_v59 }
 0x291   : > { %2707 = vmatprep.mubr.msk.f32.mxu0 %vm1185_vm1, %v1602_v25 }
 0x35f   : > { %v2657_v6 = vpop.f32.mrb[4].mxu0 }
 0x360   : > { %v1486_v7 = vadd.f32 %v2657_v6, %v1484_v5  ;;  %v1458_v8 = vpop.f32.mrb[5].mxu0  ;;  %v1955_v6 = vld [vmem:[%s3608_s9 + $0x10] sm:$0xff] }
 0x361   : > { %v1485_v9 = vadd.f32 %v1484_v5, %v1458_v8  ;;  %v1956_v8 = vld [vmem:[%s3608_s9 + $0x18] sm:$0xff] }
 0x362   : > { %v1490_v12 = vmax.f32 %v1486_v7, 0.0 }
 0x363   : > { %v1489_v10 = vmax.f32 %v1485_v9, 0.0  ;;  %v2660_v11 = vpop.f32.mrb[6].mxu0  ;;  %v2892_v9 = vpack.c.bf16 %v1956_v8, %v1955_v6 }
 0x364   : > { %v1488_v13 = vadd.f32 %v2660_v11, %v1484_v5  ;;  %v1468_v14 = vpop.f32.mrb[7].mxu0  ;;  %v1958_v11 = vld [vmem:[%s3608_s9 + $0x28] sm:$0xff] }
 0x365   : > { %v1487_v15 = vadd.f32 %v1484_v5, %v1468_v14  ;;  %2693 = vmatprep.mubr.f32.mxu1 %v1489_v10  ;;  %v1954_v5 = vld [vmem:[%s3608_s9 + $0x8] sm:$0xff]  ;;  %v1957_v10 = vld [vmem:[%s3608_s9 + $0x20] sm:$0xff] }
 0x366   : > { %2694 = vmatmul.mubr.f32.vlgmr.msra.gmra.mrb[4].mxu1 %v1490_v12  ;;  %v1492_v17 = vmax.f32 %v1488_v13, 0.0  ;;  %v2888_v7 = vpack.c.bf16 %v1954_v5, %v1953_v3  ;;  %v2896_v12 = vpack.c.bf16 %v1958_v11, %v1957_v10 }
 0x367   : > { %v1491_v16 = vmax.f32 %v1487_v15, 0.0  ;;  %2867 = vmatpush3.bf16.msra.mxu1 %v2864_v37  ;;  %v1959_v15 = vld [vmem:[%s3608_s9 + $0x30] sm:$0xff]  ;;  %v2904_v37 = vpack.c.bf16 (!%p2467_p12), %v2057_v35, %v2056_v34 }
 0x368   : > { %2869 = vmatprep.subr.bf16.mxu1 %v2868_v39 }
 0x369   : > { %2696 = vmatprep.mubr.f32.mxu1 %v1491_v16  ;;  %v1960_v16 = vld [vmem:[%s3608_s9 + $0x38] sm:$0xff]  ;;  %s3284_s9 = smov (!%p2467_p12), 64  }
 0x36a   : > { %2697 = vmatmul.mubr.f32.gmra.mrb[6].mxu1 %v1492_v17  ;;  %v2900_v17 = vpack.c.bf16 %v1960_v16, %v1959_v15 }
 0x36b   : > { %2729 = vmatprep.mubr.msk.f32.mxu1 %vm1185_vm1, %v3685_v61  ;;  %2871 = vmatpush3.bf16.msra.mxu1 %v2868_v39 }
 0x36c   : > { %2873 = vmatprep.subr.bf16.mxu1 %v2872_v42 }
 0x36e   : > { %2730 = vmatmul.mubr.msk.f32.vlgmr.msra.gmra.mrb[8].mxu1 %vm1185_vm1, %v3687_v62 }
 0x36f   : > { %2875 = vmatpush3.bf16.msra.mxu1 %v2872_v42 }
 0x370   : > { %2877 = vmatprep.subr.bf16.mxu1 %v2876_v45 }
 0x373   : > { %2879 = vmatpush3.bf16.msra.mxu1 %v2876_v45 }
 0x374   : > { %2881 = vmatprep.subr.bf16.mxu1 %v2880_v48 }
 0x377   : > { %2883 = vmatpush3.bf16.msra.mxu1 %v2880_v48 }
 0x378   : > { %2885 = vmatprep.subr.bf16.mxu1 %v2884_v51 }
 0x37b   : > { %2887 = vmatpush3.bf16.msra.mxu1 %v2884_v51 }
 0x439   : > { %v2695_v20 = vpop.f32.mrb[4].mxu1 }
 0x43a   : > { %v1585_v21 = vadd.f32 %v2695_v20, %v1512_v19  ;;  %v1579_v22 = vpop.f32.mrb[5].mxu1 }
 0x43b   : > { %v1580_v24 = vadd.f32 %v1579_v22, %v1512_v19 }
 0x43d   : > { %v2856_v26 = vpack.c.bf16 %v1585_v21, %v1580_v24  ;;  %v2698_v27 = vpop.f32.mrb[6].mxu1  ;;  %v3030_v28 = vpack.i.bf16 %v1585_v21, %v1580_v24 }
 0x43e   : > { %v1595_v29 = vadd.f32 %v2698_v27, %v1512_v19  ;;  %v1589_v30 = vpop.f32.mrb[7].mxu1 }
 0x43f   : > { %v1590_v31 = vadd.f32 %v1589_v30, %v1512_v19  ;;  %3031 = vrot.lane.b32.xlu0 %v3030_v28, %s3283_s21  ;;  %v1948_v19 = vrot.slane %v3742_v4, %v1947_v18 }
 0x441   : > { %v3035_v32 = vpack.i.bf16 %v1595_v29, %v1590_v31  ;;  %v2860_v33 = vpack.c.bf16 %v1595_v29, %v1590_v31 }
 0x443   : > { %3036 = vrot.lane.b32.xlu0 %v3035_v32, %s3283_s21 }
 0x4b1   : > { %v3032_v52 = vpop.permute.xlu0 %3031 }
 0x4b2   : > { %v3034_v53 = vunpack.i.h.bf16 %v3032_v52  ;;  %v3033_v54 = vunpack.i.l.bf16 %v3032_v52  ;;  %v3285_v52 = vmov (!%p2467_p12), 0.0|0.0  }
 0x4b3   : > { %2912 = vmatprep.subr.bf16.mxu1 (!%p2467_p12), %v3285_v52 }
 0x4b4   : > { %v2848_v55 = vpack.c.bf16 %v3034_v53, %v3033_v54  ;;  %v3287_v54 = vmov (!%p2467_p12), 0.0  }
 0x4b5   : > { %v3037_v56 = vpop.permute.xlu0 %3036 }
 0x4b6   : > { %v3039_v57 = vunpack.i.h.bf16 %v3037_v56  ;;  %v3038_v58 = vunpack.i.l.bf16 %v3037_v56  ;;  %2849 = vmatprep.subr.bf16.mxu0 %v2848_v55 }
 0x4b7   : > { %2851 = vmatpush3.bf16.msra.mxu0 %v2848_v55 }
 0x4b8   : > { %v2852_v59 = vpack.c.bf16 %v3039_v57, %v3038_v58 }
 0x4ba   : > { %2853 = vmatprep.subr.bf16.mxu0 %v2852_v59 }
 0x4bb   : > { %2855 = vmatpush3.bf16.msra.mxu0 %v2852_v59  ;;  %v2473_v59 = vld [vmem:[%s3888_s25] ss:$0 sm:$0xff] (!%p2467_p12) }
 0x4bc   : > { %2857 = vmatprep.subr.bf16.mxu0 %v2856_v26  ;;  %vm2177_vm4 = vcmp.eq.s32.totalorder (!%p2467_p12), %v3737_v2, %v2473_v59 }
 0x4bd   : > { %v2178_v3 = vsel (!%p2467_p12), %vm2177_vm4, 1.0, %v3287_v54 }
 0x4be   : > { %2708 = vmatmul.mubr.msk.f32.vlgmr.msra.gmra.mrb[8].mxu0 %vm1185_vm1, %v1603_v63 }
 0x4bf   : > { %2859 = vmatpush3.bf16.msra.mxu0 %v2856_v26  ;;  %2718 = vmatprep.mubr.msk.f32.mxu0 %vm1185_vm1, %v1599_v0  ;;  %v1963_v26 = vsub.s32 3, %v3737_v2 }
 0x4c0   : > { %2861 = vmatprep.subr.bf16.mxu0 %v2860_v33 }
 0x4c1   : > { %v1964_v27 = vrot.slane %v3742_v4, %v1963_v26  ;;  %v2059_v4 = vld [vmem:[#allocation13 + $0x18] sm:$0xff] (!%p2467_p12) }
 0x4c2   : > { %v2908_v39 = vpack.c.bf16 (!%p2467_p12), %v2059_v4, %v2058_v36 }
 0x4c3   : > { %2863 = vmatpush3.bf16.msra.mxu0 %v2860_v33 }
 0x4c4   : > { %2889 = vmatprep.subr.bf16.mxu0 %v2888_v7 }
 0x4c6   : > { %2719 = vmatmul.mubr.msk.f32.vlgmr.msra.gmra.mrb[8].mxu0 %vm1185_vm1, %v1600_v1 }
 0x4c7   : > { %2891 = vmatpush3.bf16.msra.mxu0 %v2888_v7 }
 0x4c8   : > { %2893 = vmatprep.subr.bf16.mxu0 %v2892_v9 }
 0x4cb   : > { %2895 = vmatpush3.bf16.msra.mxu0 %v2892_v9 }
 0x4cc   : > { %2897 = vmatprep.subr.bf16.mxu0 %v2896_v12 }
 0x4cf   : > { %2899 = vmatpush3.bf16.msra.mxu0 %v2896_v12 }
 0x4d0   : > { %2901 = vmatprep.subr.bf16.mxu0 %v2900_v17 }
 0x4d3   : > { %2903 = vmatpush3.bf16.msra.mxu0 %v2900_v17 }
 0x4d4   : > { %2905 = vmatprep.subr.bf16.mxu0 (!%p2467_p12), %v2904_v37 }
 0x599   : > { %v2720_v13 = vpop.f32.mrb[8].mxu0 }
 0x59a   : > { %v1773_v14 = vpop.f32.mrb[9].mxu0 }
 0x59b   : > { %2748 = vmatprep.mubr.msk.f32.mxu1 %vm1863_vm2, %v1773_v14 }
 0x59c   : > { %2749 = vmatmul.mubr.msk.f32.vlgmr.msra.gmra.mrb[8].mxu1 %vm1863_vm2, %v2720_v13 }
 0x59d   : > { %2785 = vmatprep.mubr.msk.f32.mxu1 (!%p2467_p12), %vm3286_vm3, %v3287_v54 }
 0x66f   : > { %v2750_v20 = vpop.f32.mrb[8].mxu1 }
 0x670   : > { %v1950_v21 = vadd.f32 %v2750_v20, %v1948_v19  ;;  %v1936_v22 = vpop.f32.mrb[9].mxu1 }
 0x671   : > { %v1949_v23 = vadd.f32 %v1948_v19, %v1936_v22 }
 0x672   : > { %v1952_v25 = vmax.f32 %v1950_v21, 0.0 }
 0x673   : > { %v1951_v24 = vmax.f32 %v1949_v23, 0.0 }
 0x675   : > { %2767 = vmatprep.mubr.msk.f32.mxu0 %vm1863_vm2, %v1951_v24 }
 0x676   : > { %2768 = vmatmul.mubr.msk.f32.vlgmr.msra.gmra.mrb[10].mxu0 %vm1863_vm2, %v1952_v25 }
 0x677   : > { %2907 = vmatpush3.bf16.msra.mxu0 (!%p2467_p12), %v2904_v37 }
 0x678   : > { %2909 = vmatprep.subr.bf16.mxu0 (!%p2467_p12), %v2908_v39 }
 0x67b   : > { %2911 = vmatpush3.bf16.msra.mxu0 (!%p2467_p12), %v2908_v39 }
 0x749   : > { %v2769_v28 = vpop.f32.mrb[10].mxu0  ;;  %2053 = sbr.rel (%p2467_p12) target bundleno = 2579 (0xa13), region = 112 }
 0x74a   : > { %v2043_v29 = vadd.f32 %v2769_v28, %v1964_v27  ;;  %v2037_v30 = vpop.f32.mrb[11].mxu0 }
 0x74b   : > { %v2038_v31 = vadd.f32 %v2037_v30, %v1964_v27 }
 0x74c   : > { %v2047_v32 = vadd.f32 %v2043_v29, %v3687_v62  ;;  %v2468_v62 = vld [vmem:[#allocation14] ss:$0 sm:$0xff] (!%p2467_p12) }
 0x74d   : > { %v2046_v33 = vadd.f32 %v2038_v31, %v3685_v61 }
 0x74e   : > { %2049 = vst.msk [vmem:[#allocation2 + $0x8] sm:$0xff] %vm1185_vm1, %v2047_v32 }
 0x74f   : > { %2048 = vst.msk [vmem:[#allocation2] sm:$0xff] %vm1185_vm1, %v2046_v33 }
 0x755   : > { %v2055_v61 = vld [vmem:[#allocation2 + $0x8] sm:$0xff] }
 0x756   : > { %v2054_v38 = vld [vmem:[#allocation2] sm:$0xff] }
 0x757   : > { %2778 = vmatprep.mubr.msk.f32.mxu0 %vm1185_vm1, %v2054_v38 }
 0x758   : > { %2779 = vmatmul.mubr.msk.f32.vlgmr.msra.gmra.mrb[0].mxu0 %vm1185_vm1, %v2055_v61 }
 0x82b   : > { %v2780_v40 = vpop.f32.mrb[0].mxu0 }
 0x82c   : > { %v2145_v41 = vadd.f32 %v2780_v40, %v2468_v62  ;;  %v2139_v42 = vpop.f32.mrb[1].mxu0 }
 0x82d   : > { %v2140_v43 = vadd.f32 %v2468_v62, %v2139_v42 }
 0x82e   : > { %v2472_v44 = vmul.f32 -1.442695, %v2145_v41 }
 0x82f   : > { %v2471_v45 = vmul.f32 -1.442695, %v2140_v43 }
 0x830   : > { %3045 = vpow2.f32 %v2472_v44 }
 0x831   : > { %3047 = vpow2.f32 %v2471_v45 }
 0x83a   : > { %v3046_v46 = vpop.eup %3045 }
 0x83b   : > { %v3048_v47 = vpop.eup %3047  ;;  %v2155_v49 = vadd.f32 1.0, %v3046_v46 }
 0x83c   : > { %v2154_v48 = vadd.f32 1.0, %v3048_v47 }
 0x83e   : > { %3049 = vrcp.f32 %v2154_v48 }
 0x83f   : > { %3051 = vrcp.f32 %v2155_v49 }
 0x848   : > { %v3050_v50 = vpop.eup %3049 }
 0x849   : > { %2162 = vrot.lane.b32.xlu0 %v3050_v50, %s3284_s9  ;;  %v3052_v51 = vpop.eup %3051 }
 0x84d   : > { %2164 = vrot.lane.b32.xlu0 %v3052_v51, %s3284_s9 }
 0x8bb   : > { %v2163_v53 = vpop.permute.xlu0 %2162 }
 0x8bc   : > { %v2168_v56 = vmul.f32 %v2163_v53, %v2140_v43 }
 0x8bf   : > { %v2165_v55 = vpop.permute.xlu0 %2164 }
 0x8c0   : > { %v2169_v57 = vmul.f32 %v2165_v55, %v2145_v41 }
 0x8c2   : > { %v3040_v58 = vpack.i.bf16 %v2169_v57, %v2168_v56 }
 0x8c4   : > { %3041 = vrot.lane.b32.xlu1 %v3040_v58, %s3284_s9 }
 0x936   : > { %v3042_v60 = vpop.permute.xlu1 %3041 }
 0x937   : > { %v3044_v63 = vunpack.i.h.bf16 %v3042_v60  ;;  %v3043_v0 = vunpack.i.l.bf16 %v3042_v60 }
 0x939   : > { %v2913_v1 = vpack.c.bf16 %v3044_v63, %v3043_v0 }
 0x93b   : > { %2914 = vmatpush3.bf16.msra.mxu1 %v2913_v1 }
 0x93e   : > { %2786 = vmatmul.mubr.msk.f32.vlgmr.msra.gmra.mrb[0].mxu1 %vm984_vm0, %v2178_v3 }
 0xa11   : > { %v2256_v5 = vpop.f32.mrb[0].mxu1 }
 0xa12   : > { %2261 = vst.msk [vmem:[#allocation17] sm:$0xf] %vm2260_vm5, %v2256_v5  ;;  %v2787_v6 = vpop.f32.mrb[1].mxu1 }
 0xa13 PF: > { %p2977_p0 = scmp.eq.s32.totalorder %s3395_s27, 2  ;;  %s3288_s19 = smov [#allocation17]  }
 0xa14   : > { %s2269_s4 = sshll.u32 %s3288_s19, 4  ;;  %s2270_s4 = int_to_ptr.vmem [resolvable:$true] %s2269_s4 }
 0xa15   : > { %s3195_s17 = scalar_lea.vmem %s2270_s4, 64  ;;  %p3202_p2 = scmp.lt.s32.totalorder %s2270_s4, %s2270_s4 }
 0xa16   : > { %p3196_p5 = scmp.ne.s32.totalorder %s2270_s4, %s3195_s17  ;;  %p3203_p13 = scmp.lt.s32.totalorder %s3195_s17, %s3195_s17 }
 0xa18   : > { %p3197_p8 = pnand %p3196_p5, %p2977_p0  ;;  %p3204_p9 = por %p3203_p13, %p3202_p2 }
 0xa1a   : > { %p3198_p7 = pneg %p3197_p8 }
 0xa1c   : > { %p3205_p3 = pnand %p3204_p9, %p3198_p7 }
 0xa1e   : > { %3208 = shalt.err (!%p3205_p3)
}
 0xa1f   : > { %s3889_s24 = sld [smem:[#allocation31_spill]] }
 0xa25   : > { %s3890_s3 = smov %s3889_s24  ;;  %s3209_s26 = scalar_lea.hbm %s3889_s24, 64 }
 0xa26   : > { %p3210_p1 = scmp.ne.s32.totalorder %s3890_s3, %s3209_s26  ;;  %p3215_p10 = scmp.lt.u32.totalorder %s3209_s26, %s3890_s3 }
 0xa28   : > { %p3211_p4 = pnand %p3210_p1, %p2977_p0 }
 0xa2a   : > { %p3212_p6 = pneg %p3211_p4 }
 0xa2c   : > { %p3217_p11 = pnand %p3215_p10, %p3212_p6 }
 0xa2e   : > { %3220 = shalt.err (!%p3217_p11)
}
 0xa2f   : > { %2948 = dma.vmem_to_hbm [thread:$0]  (%p2977_p0), %s2270_s4, 64, %s3890_s3, [#allocation10]  }
 0xa30   : > { %3254 = dma.done.wait (%p2977_p0), [#allocation10], 64  }
 0xa31   : > { %3256 = vsyncadd (%p2977_p0), [#allocation10], 4294967232 }
 0xa32 PF: > { %p27_p12 = scmp.ge.s32.totalorder %s3506_s5, 5   ;;  %s3891_s21 = smov %s3263_s22 }
 0xa33   : > { %s3892_s22 = smov %s3267_s23  ;;  %s3893_s23 = smov %s3518_s29 }
 0xa34   : > { %s3894_s24 = smov %s3506_s5  ;;  %29 = sbr.rel (!%p27_p12) target bundleno = 15 (0xf), region = 156 }
 0xa3b   :  { %2282 = vsyncpa [#allocation9], 1 }
 0xa3c   :  { %2284 = vsyncpa [#allocation9 + $0x1], 1 }
 0xa3d   :  { %2285 = vsyncpa [#allocation12], 1 }
 0xa3e   :  { %2286 = vsyncpa [#allocation15], 1 }
 0xa3f   :  { %2287 = vsyncpa [#allocation10], 1 }
 0xa40   :  { %2289 = vsyncpa [#allocation10 + $0x1], 1 }

</bundles_post_ra>
